<compile_context>
chip_gen: v5e
topology: v5e:2x2
jax: 0.10.0
libtpu: 0.0.40
codegen_flags: <defaults>
</compile_context>

<pallas_src>
import functools
import math

import jax
import jax.numpy as jnp
import numpy as np
from jax import lax
from jax.experimental import pallas as pl
from jax.experimental.pallas import tpu as pltpu

# ---- small, deterministic configuration consistent with the module ----
LATENT_DIM = 32
KERNEL_SIZE = 5
STRIDE = 2
DECODER_CHANNELS = [16, 8, 4]     # decoder_channel_list -> 2 (ConvT, Conv) blocks
IN_DIM_LIST = [8, 16, 32]         # only in_dim_list[0] is used (final_feature_length)
BATCH = 2
EPS = 1e-5                        # nn.InstanceNorm1d default (affine=False)
SLOPE = 0.01                      # nn.LeakyReLU default negative_slope


# ------------------------- in-kernel helpers -------------------------

def _leaky(y):
    return jnp.where(y >= 0, y, SLOPE * y)


def _inorm_flat(y, seg, seg_t, inv_len):
    """InstanceNorm over each channel's lane segment of the flat (N, C*J) layout.

    seg  : (C*J, C) 0/1 mask selecting the valid (j < L) lanes of each channel.
    seg_t: (C, C*J) transpose of seg (used to broadcast per-channel stats back).
    Pad lanes are 0 on input and stay exactly 0 on output.
    """
    s = jnp.dot(y, seg, preferred_element_type=jnp.float32)          # (N, C) sums
    ss = jnp.dot(y * y, seg, preferred_element_type=jnp.float32)     # (N, C) sums of squares
    mean = s * inv_len
    var = ss * inv_len - mean * mean                                  # biased variance
    inv_std = lax.rsqrt(var + EPS)
    mean_f = jnp.dot(mean, seg_t, preferred_element_type=jnp.float32)
    inv_f = jnp.dot(inv_std, seg_t, preferred_element_type=jnp.float32)
    return (y - mean_f) * inv_f


def _decoder_kernel(*refs, n_blocks, inv_lens):
    # refs: z, W_fc, b_fc, then per block: (M_convT, b_convT, S, S^T, M_conv, b_conv, S, S^T),
    #       and finally the output ref.
    out_ref = refs[-1]

    # nn.Linear + view(-1, C0, L0), emitted directly into the flat lane-padded layout.
    y = jnp.dot(refs[0][...], refs[1][...],
                preferred_element_type=jnp.float32) + refs[2][...]

    base = 3
    for b in range(n_blocks):
        m_ct, b_ct, s_ct, st_ct, m_c, b_c, s_c, st_c = refs[base:base + 8]
        base += 8
        inv1, inv2 = inv_lens[2 * b], inv_lens[2 * b + 1]

        seg, seg_t = s_ct[...], st_ct[...]
        # ConvTranspose1d (zero-dilation + pad + correlation folded into one matmul) + bias
        y = jnp.dot(y, m_ct[...], preferred_element_type=jnp.float32) + b_ct[...]
        y = _inorm_flat(y, seg, seg_t, inv1)        # InstanceNorm1d(out_c)
        y = _leaky(y)                               # LeakyReLU
        y = _inorm_flat(y, seg, seg_t, inv1)        # InstanceNorm1d(in_c) (affine=False)

        seg, seg_t = s_c[...], st_c[...]
        # Conv1d (padding folded into the matrix) + bias
        y = jnp.dot(y, m_c[...], preferred_element_type=jnp.float32) + b_c[...]
        y = _inorm_flat(y, seg, seg_t, inv2)        # InstanceNorm1d(out_c)
        y = _leaky(y)                               # LeakyReLU

    out_ref[...] = y.astype(out_ref.dtype)


# ------------------------- init-time construction of the fused linear maps -------------------------

def _pad_len(C, L):
    """Smallest J >= L such that C*J is a multiple of 128 (lane-dense flat width)."""
    step = 128 // math.gcd(C, 128)
    return ((L + step - 1) // step) * step


def _linear_map_matrix(apply_fn, C_in, L_in, J_in, C_out, L_out, J_out):
    """Materialize the (C_in*J_in, C_out*J_out) matrix of a linear conv-like map by pushing
    basis tensors through the exact reference convolution (no bias)."""
    P = C_in * L_in
    basis = jnp.eye(P, dtype=jnp.float32).reshape(P, C_in, L_in)
    cols = np.asarray(apply_fn(basis))                       # (P, C_out, L_out)
    mat = np.zeros((C_in * J_in, C_out * J_out), np.float32)
    rows = (np.arange(C_in)[:, None] * J_in + np.arange(L_in)[None, :]).reshape(-1)
    buf = np.zeros((P, C_out, J_out), np.float32)
    buf[:, :, :L_out] = cols
    mat[rows, :] = buf.reshape(P, C_out * J_out)
    return jnp.asarray(mat)


def _flat_bias(b, C, L, J):
    v = np.zeros((C, J), np.float32)
    v[:, :L] = np.asarray(b, np.float32)[:, None]
    return jnp.asarray(v.reshape(1, C * J))


def _seg_masks(C, L, J):
    s = np.zeros((C * J, C), np.float32)
    for c in range(C):
        s[c * J: c * J + L, c] = 1.0
    return jnp.asarray(s), jnp.asarray(np.ascontiguousarray(s.T))


def prepare_decoder(params):
    K, S = KERNEL_SIZE, STRIDE
    chans = DECODER_CHANNELS
    C0, L0 = chans[0], IN_DIM_LIST[0]
    n_blocks = min(len(chans) - 1, len(IN_DIM_LIST))
    dn = ("NCH", "OIH", "NCH")
    hp = lax.Precision.HIGHEST

    # ---- nn.Linear -> flat lane-padded layout ----
    J0 = _pad_len(C0, L0)
    fcw = np.asarray(params["fc_w"], np.float32)             # (C0*L0, latent) torch layout
    fcb = np.asarray(params["fc_b"], np.float32)
    w_fc = np.zeros((LATENT_DIM, C0 * J0), np.float32)
    b_fc = np.zeros((1, C0 * J0), np.float32)
    for c in range(C0):
        w_fc[:, c * J0:c * J0 + L0] = fcw[c * L0:(c + 1) * L0, :].T
        b_fc[0, c * J0:c * J0 + L0] = fcb[c * L0:(c + 1) * L0]
    consts = [jnp.asarray(w_fc), jnp.asarray(b_fc)]

    inv_lens = []
    C_cur, L_cur, J_cur = C0, L0, J0
    for idx in range(n_blocks):
        out_c = chans[idx + 1]
        wt, bt = params[f"wt{idx}"], params[f"bt{idx}"]
        wc, bc = params[f"wc{idx}"], params[f"bc{idx}"]

        # ConvTranspose1d(in_c, out_c, K, stride=S, padding=0)
        L1 = (L_cur - 1) * S + K
        J1 = _pad_len(out_c, L1)
        rhs = jnp.transpose(wt[:, :, ::-1], (1, 0, 2))        # (out_c, in_c, K), flipped

        def ct_fn(x, rhs=rhs):
            return lax.conv_general_dilated(
                x, rhs, window_strides=(1,), padding=[(K - 1, K - 1)],
                lhs_dilation=(S,), dimension_numbers=dn, precision=hp)

        m_ct = _linear_map_matrix(ct_fn, C_cur, L_cur, J_cur, out_c, L1, J1)
        b_ct = _flat_bias(bt, out_c, L1, J1)
        s_ct, st_ct = _seg_masks(out_c, L1, J1)

        # Conv1d(out_c, out_c, K, stride=1, padding=P)
        P = S if idx == (len(chans) - 1) - 1 else S - 1
        L2 = L1 + 2 * P - K + 1
        J2 = _pad_len(out_c, L2)

        def c_fn(x, wc=wc, P=P):
            return lax.conv_general_dilated(
                x, wc, window_strides=(1,), padding=[(P, P)],
                dimension_numbers=dn, precision=hp)

        m_c = _linear_map_matrix(c_fn, out_c, L1, J1, out_c, L2, J2)
        b_c = _flat_bias(bc, out_c, L2, J2)
        s_c, st_c = _seg_masks(out_c, L2, J2)

        consts += [m_ct, b_ct, s_ct, st_ct, m_c, b_c, s_c, st_c]
        inv_lens += [1.0 / L1, 1.0 / L2]
        C_cur, L_cur, J_cur = out_c, L2, J2

    return tuple(consts), tuple(inv_lens), n_blocks, (C_cur, L_cur, J_cur)


def make_decoder_fn(params):
    consts, inv_lens, n_blocks, (c_f, l_f, j_f) = prepare_decoder(params)
    kern = functools.partial(_decoder_kernel, n_blocks=n_blocks, inv_lens=inv_lens)

    def _full(a):
        return pl.BlockSpec(a.shape, lambda i: (0, 0))        # every operand is 2-D, whole-block

    @jax.jit
    def forward(z):
        n = z.shape[0]
        flat = pl.pallas_call(
            kern,
            out_shape=jax.ShapeDtypeStruct((n, c_f * j_f), jnp.float32),
            grid=(1,),
            in_specs=[_full(z)] + [_full(c) for c in consts],
            out_specs=pl.BlockSpec((n, c_f * j_f), lambda i: (0, 0)),
            compiler_params=pltpu.CompilerParams(
                dimension_semantics=("arbitrary",),
                vmem_limit_bytes=16 * 1024 * 1024),            # whole working set ~1 MiB
        )(z, *consts)
        # Only per-call glue: strip the lane padding back to the NCL output layout.
        return flat.reshape(n, c_f, j_f)[:, :, :l_f]

    return forward


# ------------------------- pure-JAX reference (for verification) -------------------------

def _instance_norm(y, eps=EPS):
    mean = jnp.mean(y, axis=-1, keepdims=True)
    var = jnp.mean((y - mean) ** 2, axis=-1, keepdims=True)
    return (y - mean) * lax.rsqrt(var + eps)


def decoder_forward_reference(z, params):
    K, S = KERNEL_SIZE, STRIDE
    chans = DECODER_CHANNELS
    C0, L0 = chans[0], IN_DIM_LIST[0]
    n_blocks = min(len(chans) - 1, len(IN_DIM_LIST))
    dn = ("NCH", "OIH", "NCH")

    x = z @ params["fc_w"].T + params["fc_b"]
    x = x.reshape(-1, C0, L0)
    for idx in range(n_blocks):
        wt, bt = params[f"wt{idx}"], params[f"bt{idx}"]
        wc, bc = params[f"wc{idx}"], params[f"bc{idx}"]
        rhs = jnp.transpose(wt[:, :, ::-1], (1, 0, 2))
        x = lax.conv_general_dilated(x, rhs, window_strides=(1,),
                                     padding=[(K - 1, K - 1)], lhs_dilation=(S,),
                                     dimension_numbers=dn,
                                     precision=lax.Precision.HIGHEST)
        x = x + bt[None, :, None]
        x = _instance_norm(x)
        x = jnp.where(x >= 0, x, SLOPE * x)
        x = _instance_norm(x)
        P = S if idx == (len(chans) - 1) - 1 else S - 1
        x = lax.conv_general_dilated(x, wc, window_strides=(1,),
                                     padding=[(P, P)], dimension_numbers=dn,
                                     precision=lax.Precision.HIGHEST)
        x = x + bc[None, :, None]
        x = _instance_norm(x)
        x = jnp.where(x >= 0, x, SLOPE * x)
    return x


# ------------------------- deterministic parameter init (torch layouts) -------------------------

def init_params(key):
    K = KERNEL_SIZE
    chans = DECODER_CHANNELS
    C0, L0 = chans[0], IN_DIM_LIST[0]
    n_blocks = min(len(chans) - 1, len(IN_DIM_LIST))
    params = {}
    key, k1, k2 = jax.random.split(key, 3)
    params["fc_w"] = jax.random.normal(k1, (C0 * L0, LATENT_DIM), jnp.float32) / np.sqrt(LATENT_DIM)
    params["fc_b"] = jax.random.normal(k2, (C0 * L0,), jnp.float32) * 0.1
    for idx in range(n_blocks):
        in_c, out_c = chans[idx], chans[idx + 1]
        key, k1, k2, k3, k4 = jax.random.split(key, 5)
        params[f"wt{idx}"] = jax.random.normal(k1, (in_c, out_c, K), jnp.float32) / np.sqrt(in_c * K)
        params[f"bt{idx}"] = jax.random.normal(k2, (out_c,), jnp.float32) * 0.1
        params[f"wc{idx}"] = jax.random.normal(k3, (out_c, out_c, K), jnp.float32) / np.sqrt(out_c * K)
        params[f"bc{idx}"] = jax.random.normal(k4, (out_c,), jnp.float32) * 0.1
    return params


if __name__ == "__main__":
    key = jax.random.PRNGKey(0)
    key, kz = jax.random.split(key)
    params = init_params(key)
    z = jax.random.normal(kz, (BATCH, LATENT_DIM), jnp.float32)

    decoder = make_decoder_fn(params)          # init-time weight folding (once)
    out = jax.block_until_ready(decoder(z))    # single fused Pallas kernel

    ref = jax.block_until_ready(decoder_forward_reference(z, params))
    assert out.shape == ref.shape, (out.shape, ref.shape)
    np.testing.assert_allclose(np.asarray(out), np.asarray(ref), rtol=2e-2, atol=2e-2)

    print("KERNEL_OK")
</pallas_src>

<mosaic_0001>
module attributes {stable_mosaic.version = 11 : i64} {
  func.func @_decoder_kernel(%arg0: i32, %arg1: memref<2x32xf32, #tpu.memory_space<vmem>>, %arg2: memref<32x128xf32, #tpu.memory_space<vmem>>, %arg3: memref<1x128xf32, #tpu.memory_space<vmem>>, %arg4: memref<128x256xf32, #tpu.memory_space<vmem>>, %arg5: memref<1x256xf32, #tpu.memory_space<vmem>>, %arg6: memref<256x8xf32, #tpu.memory_space<vmem>>, %arg7: memref<8x256xf32, #tpu.memory_space<vmem>>, %arg8: memref<256x256xf32, #tpu.memory_space<vmem>>, %arg9: memref<1x256xf32, #tpu.memory_space<vmem>>, %arg10: memref<256x8xf32, #tpu.memory_space<vmem>>, %arg11: memref<8x256xf32, #tpu.memory_space<vmem>>, %arg12: memref<256x256xf32, #tpu.memory_space<vmem>>, %arg13: memref<1x256xf32, #tpu.memory_space<vmem>>, %arg14: memref<256x4xf32, #tpu.memory_space<vmem>>, %arg15: memref<4x256xf32, #tpu.memory_space<vmem>>, %arg16: memref<256x256xf32, #tpu.memory_space<vmem>>, %arg17: memref<1x256xf32, #tpu.memory_space<vmem>>, %arg18: memref<256x4xf32, #tpu.memory_space<vmem>>, %arg19: memref<4x256xf32, #tpu.memory_space<vmem>>, %arg20: memref<2x256xf32, #tpu.memory_space<vmem>>) attributes {dimension_semantics = [#tpu.dimension_semantics<arbitrary>], iteration_bounds = array<i64: 1>, scalar_prefetch = 0 : i64, scratch_operands = 0 : i64, tpu.core_type = #tpu.core_type<tc>, window_params = [{pipeline_mode = #tpu.pipeline_mode<synchronous>, transform_indices = @transform_0, window_bounds = array<i64: 2, 32>}, {pipeline_mode = #tpu.pipeline_mode<synchronous>, transform_indices = @transform_1, window_bounds = array<i64: 32, 128>}, {pipeline_mode = #tpu.pipeline_mode<synchronous>, transform_indices = @transform_2, window_bounds = array<i64: 1, 128>}, {pipeline_mode = #tpu.pipeline_mode<synchronous>, transform_indices = @transform_3, window_bounds = array<i64: 128, 256>}, {pipeline_mode = #tpu.pipeline_mode<synchronous>, transform_indices = @transform_4, window_bounds = array<i64: 1, 256>}, {pipeline_mode = #tpu.pipeline_mode<synchronous>, transform_indices = @transform_5, window_bounds = array<i64: 256, 8>}, {pipeline_mode = #tpu.pipeline_mode<synchronous>, transform_indices = @transform_6, window_bounds = array<i64: 8, 256>}, {pipeline_mode = #tpu.pipeline_mode<synchronous>, transform_indices = @transform_7, window_bounds = array<i64: 256, 256>}, {pipeline_mode = #tpu.pipeline_mode<synchronous>, transform_indices = @transform_8, window_bounds = array<i64: 1, 256>}, {pipeline_mode = #tpu.pipeline_mode<synchronous>, transform_indices = @transform_9, window_bounds = array<i64: 256, 8>}, {pipeline_mode = #tpu.pipeline_mode<synchronous>, transform_indices = @transform_10, window_bounds = array<i64: 8, 256>}, {pipeline_mode = #tpu.pipeline_mode<synchronous>, transform_indices = @transform_11, window_bounds = array<i64: 256, 256>}, {pipeline_mode = #tpu.pipeline_mode<synchronous>, transform_indices = @transform_12, window_bounds = array<i64: 1, 256>}, {pipeline_mode = #tpu.pipeline_mode<synchronous>, transform_indices = @transform_13, window_bounds = array<i64: 256, 4>}, {pipeline_mode = #tpu.pipeline_mode<synchronous>, transform_indices = @transform_14, window_bounds = array<i64: 4, 256>}, {pipeline_mode = #tpu.pipeline_mode<synchronous>, transform_indices = @transform_15, window_bounds = array<i64: 256, 256>}, {pipeline_mode = #tpu.pipeline_mode<synchronous>, transform_indices = @transform_16, window_bounds = array<i64: 1, 256>}, {pipeline_mode = #tpu.pipeline_mode<synchronous>, transform_indices = @transform_17, window_bounds = array<i64: 256, 4>}, {pipeline_mode = #tpu.pipeline_mode<synchronous>, transform_indices = @transform_18, window_bounds = array<i64: 4, 256>}, {pipeline_mode = #tpu.pipeline_mode<synchronous>, transform_indices = @transform_19, window_bounds = array<i64: 2, 256>}]} {
    %c0 = arith.constant 0 : index
    %c0_0 = arith.constant 0 : index
    %0 = vector.load %arg1[%c0, %c0_0] : memref<2x32xf32, #tpu.memory_space<vmem>>, vector<2x32xf32>
    %c0_1 = arith.constant 0 : index
    %c0_2 = arith.constant 0 : index
    %1 = vector.load %arg2[%c0_1, %c0_2] : memref<32x128xf32, #tpu.memory_space<vmem>>, vector<32x128xf32>
    %cst = arith.constant dense<0.000000e+00> : vector<2x128xf32>
    %2 = tpu.matmul %0, %1, %cst {dimension_numbers = #tpu.dot_dimension_numbers<[1], [0], [0], [1], [0, 0, 1, 1], [], []>} : vector<2x32xf32>, vector<32x128xf32>, vector<2x128xf32> -> vector<2x128xf32>
    %c0_3 = arith.constant 0 : index
    %c0_4 = arith.constant 0 : index
    %3 = vector.load %arg3[%c0_3, %c0_4] : memref<1x128xf32, #tpu.memory_space<vmem>>, vector<1x128xf32>
    %4 = vector.broadcast %3 : vector<1x128xf32> to vector<2x128xf32>
    %5 = arith.addf %2, %4 : vector<2x128xf32>
    %c0_5 = arith.constant 0 : index
    %c0_6 = arith.constant 0 : index
    %6 = vector.load %arg6[%c0_5, %c0_6] : memref<256x8xf32, #tpu.memory_space<vmem>>, vector<256x8xf32>
    %c0_7 = arith.constant 0 : index
    %c0_8 = arith.constant 0 : index
    %7 = vector.load %arg7[%c0_7, %c0_8] : memref<8x256xf32, #tpu.memory_space<vmem>>, vector<8x256xf32>
    %c0_9 = arith.constant 0 : index
    %c0_10 = arith.constant 0 : index
    %8 = vector.load %arg4[%c0_9, %c0_10] : memref<128x256xf32, #tpu.memory_space<vmem>>, vector<128x256xf32>
    %cst_11 = arith.constant dense<0.000000e+00> : vector<2x256xf32>
    %9 = tpu.matmul %5, %8, %cst_11 {dimension_numbers = #tpu.dot_dimension_numbers<[1], [0], [0], [1], [0, 0, 1, 1], [], []>} : vector<2x128xf32>, vector<128x256xf32>, vector<2x256xf32> -> vector<2x256xf32>
    %c0_12 = arith.constant 0 : index
    %c0_13 = arith.constant 0 : index
    %10 = vector.load %arg5[%c0_12, %c0_13] : memref<1x256xf32, #tpu.memory_space<vmem>>, vector<1x256xf32>
    %11 = vector.broadcast %10 : vector<1x256xf32> to vector<2x256xf32>
    %12 = arith.addf %9, %11 : vector<2x256xf32>
    %cst_14 = arith.constant dense<0.000000e+00> : vector<2x8xf32>
    %13 = tpu.matmul %12, %6, %cst_14 {dimension_numbers = #tpu.dot_dimension_numbers<[1], [0], [0], [1], [0, 0, 1, 1], [], []>} : vector<2x256xf32>, vector<256x8xf32>, vector<2x8xf32> -> vector<2x8xf32>
    %14 = arith.mulf %12, %12 : vector<2x256xf32>
    %cst_15 = arith.constant dense<0.000000e+00> : vector<2x8xf32>
    %15 = tpu.matmul %14, %6, %cst_15 {dimension_numbers = #tpu.dot_dimension_numbers<[1], [0], [0], [1], [0, 0, 1, 1], [], []>} : vector<2x256xf32>, vector<256x8xf32>, vector<2x8xf32> -> vector<2x8xf32>
    %cst_16 = arith.constant 0.0526315793 : f32
    %16 = vector.broadcast %cst_16 : f32 to vector<2x8xf32>
    %17 = arith.mulf %13, %16 : vector<2x8xf32>
    %cst_17 = arith.constant 0.0526315793 : f32
    %18 = vector.broadcast %cst_17 : f32 to vector<2x8xf32>
    %19 = arith.mulf %15, %18 : vector<2x8xf32>
    %20 = arith.mulf %17, %17 : vector<2x8xf32>
    %21 = arith.subf %19, %20 : vector<2x8xf32>
    %cst_18 = arith.constant 9.99999974E-6 : f32
    %22 = vector.broadcast %cst_18 : f32 to vector<2x8xf32>
    %23 = arith.addf %21, %22 : vector<2x8xf32>
    %24 = math.rsqrt %23 : vector<2x8xf32>
    %cst_19 = arith.constant dense<0.000000e+00> : vector<2x256xf32>
    %25 = tpu.matmul %17, %7, %cst_19 {dimension_numbers = #tpu.dot_dimension_numbers<[1], [0], [0], [1], [0, 0, 1, 1], [], []>} : vector<2x8xf32>, vector<8x256xf32>, vector<2x256xf32> -> vector<2x256xf32>
    %cst_20 = arith.constant dense<0.000000e+00> : vector<2x256xf32>
    %26 = tpu.matmul %24, %7, %cst_20 {dimension_numbers = #tpu.dot_dimension_numbers<[1], [0], [0], [1], [0, 0, 1, 1], [], []>} : vector<2x8xf32>, vector<8x256xf32>, vector<2x256xf32> -> vector<2x256xf32>
    %27 = arith.subf %12, %25 : vector<2x256xf32>
    %28 = arith.mulf %27, %26 : vector<2x256xf32>
    %cst_21 = arith.constant 0.000000e+00 : f32
    %29 = vector.broadcast %cst_21 : f32 to vector<2x256xf32>
    %30 = arith.cmpf oge, %28, %29 : vector<2x256xf32>
    %cst_22 = arith.constant 0.00999999977 : f32
    %31 = vector.broadcast %cst_22 : f32 to vector<2x256xf32>
    %32 = arith.mulf %31, %28 : vector<2x256xf32>
    %33 = arith.select %30, %28, %32 : vector<2x256xi1>, vector<2x256xf32>
    %cst_23 = arith.constant dense<0.000000e+00> : vector<2x8xf32>
    %34 = tpu.matmul %33, %6, %cst_23 {dimension_numbers = #tpu.dot_dimension_numbers<[1], [0], [0], [1], [0, 0, 1, 1], [], []>} : vector<2x256xf32>, vector<256x8xf32>, vector<2x8xf32> -> vector<2x8xf32>
    %35 = arith.mulf %33, %33 : vector<2x256xf32>
    %cst_24 = arith.constant dense<0.000000e+00> : vector<2x8xf32>
    %36 = tpu.matmul %35, %6, %cst_24 {dimension_numbers = #tpu.dot_dimension_numbers<[1], [0], [0], [1], [0, 0, 1, 1], [], []>} : vector<2x256xf32>, vector<256x8xf32>, vector<2x8xf32> -> vector<2x8xf32>
    %cst_25 = arith.constant 0.0526315793 : f32
    %37 = vector.broadcast %cst_25 : f32 to vector<2x8xf32>
    %38 = arith.mulf %34, %37 : vector<2x8xf32>
    %cst_26 = arith.constant 0.0526315793 : f32
    %39 = vector.broadcast %cst_26 : f32 to vector<2x8xf32>
    %40 = arith.mulf %36, %39 : vector<2x8xf32>
    %41 = arith.mulf %38, %38 : vector<2x8xf32>
    %42 = arith.subf %40, %41 : vector<2x8xf32>
    %cst_27 = arith.constant 9.99999974E-6 : f32
    %43 = vector.broadcast %cst_27 : f32 to vector<2x8xf32>
    %44 = arith.addf %42, %43 : vector<2x8xf32>
    %45 = math.rsqrt %44 : vector<2x8xf32>
    %cst_28 = arith.constant dense<0.000000e+00> : vector<2x256xf32>
    %46 = tpu.matmul %38, %7, %cst_28 {dimension_numbers = #tpu.dot_dimension_numbers<[1], [0], [0], [1], [0, 0, 1, 1], [], []>} : vector<2x8xf32>, vector<8x256xf32>, vector<2x256xf32> -> vector<2x256xf32>
    %cst_29 = arith.constant dense<0.000000e+00> : vector<2x256xf32>
    %47 = tpu.matmul %45, %7, %cst_29 {dimension_numbers = #tpu.dot_dimension_numbers<[1], [0], [0], [1], [0, 0, 1, 1], [], []>} : vector<2x8xf32>, vector<8x256xf32>, vector<2x256xf32> -> vector<2x256xf32>
    %48 = arith.subf %33, %46 : vector<2x256xf32>
    %49 = arith.mulf %48, %47 : vector<2x256xf32>
    %c0_30 = arith.constant 0 : index
    %c0_31 = arith.constant 0 : index
    %50 = vector.load %arg10[%c0_30, %c0_31] : memref<256x8xf32, #tpu.memory_space<vmem>>, vector<256x8xf32>
    %c0_32 = arith.constant 0 : index
    %c0_33 = arith.constant 0 : index
    %51 = vector.load %arg11[%c0_32, %c0_33] : memref<8x256xf32, #tpu.memory_space<vmem>>, vector<8x256xf32>
    %c0_34 = arith.constant 0 : index
    %c0_35 = arith.constant 0 : index
    %52 = vector.load %arg8[%c0_34, %c0_35] : memref<256x256xf32, #tpu.memory_space<vmem>>, vector<256x256xf32>
    %cst_36 = arith.constant dense<0.000000e+00> : vector<2x256xf32>
    %53 = tpu.matmul %49, %52, %cst_36 {dimension_numbers = #tpu.dot_dimension_numbers<[1], [0], [0], [1], [0, 0, 1, 1], [], []>} : vector<2x256xf32>, vector<256x256xf32>, vector<2x256xf32> -> vector<2x256xf32>
    %c0_37 = arith.constant 0 : index
    %c0_38 = arith.constant 0 : index
    %54 = vector.load %arg9[%c0_37, %c0_38] : memref<1x256xf32, #tpu.memory_space<vmem>>, vector<1x256xf32>
    %55 = vector.broadcast %54 : vector<1x256xf32> to vector<2x256xf32>
    %56 = arith.addf %53, %55 : vector<2x256xf32>
    %cst_39 = arith.constant dense<0.000000e+00> : vector<2x8xf32>
    %57 = tpu.matmul %56, %50, %cst_39 {dimension_numbers = #tpu.dot_dimension_numbers<[1], [0], [0], [1], [0, 0, 1, 1], [], []>} : vector<2x256xf32>, vector<256x8xf32>, vector<2x8xf32> -> vector<2x8xf32>
    %58 = arith.mulf %56, %56 : vector<2x256xf32>
    %cst_40 = arith.constant dense<0.000000e+00> : vector<2x8xf32>
    %59 = tpu.matmul %58, %50, %cst_40 {dimension_numbers = #tpu.dot_dimension_numbers<[1], [0], [0], [1], [0, 0, 1, 1], [], []>} : vector<2x256xf32>, vector<256x8xf32>, vector<2x8xf32> -> vector<2x8xf32>
    %cst_41 = arith.constant 0.0588235296 : f32
    %60 = vector.broadcast %cst_41 : f32 to vector<2x8xf32>
    %61 = arith.mulf %57, %60 : vector<2x8xf32>
    %cst_42 = arith.constant 0.0588235296 : f32
    %62 = vector.broadcast %cst_42 : f32 to vector<2x8xf32>
    %63 = arith.mulf %59, %62 : vector<2x8xf32>
    %64 = arith.mulf %61, %61 : vector<2x8xf32>
    %65 = arith.subf %63, %64 : vector<2x8xf32>
    %cst_43 = arith.constant 9.99999974E-6 : f32
    %66 = vector.broadcast %cst_43 : f32 to vector<2x8xf32>
    %67 = arith.addf %65, %66 : vector<2x8xf32>
    %68 = math.rsqrt %67 : vector<2x8xf32>
    %cst_44 = arith.constant dense<0.000000e+00> : vector<2x256xf32>
    %69 = tpu.matmul %61, %51, %cst_44 {dimension_numbers = #tpu.dot_dimension_numbers<[1], [0], [0], [1], [0, 0, 1, 1], [], []>} : vector<2x8xf32>, vector<8x256xf32>, vector<2x256xf32> -> vector<2x256xf32>
    %cst_45 = arith.constant dense<0.000000e+00> : vector<2x256xf32>
    %70 = tpu.matmul %68, %51, %cst_45 {dimension_numbers = #tpu.dot_dimension_numbers<[1], [0], [0], [1], [0, 0, 1, 1], [], []>} : vector<2x8xf32>, vector<8x256xf32>, vector<2x256xf32> -> vector<2x256xf32>
    %71 = arith.subf %56, %69 : vector<2x256xf32>
    %72 = arith.mulf %71, %70 : vector<2x256xf32>
    %cst_46 = arith.constant 0.000000e+00 : f32
    %73 = vector.broadcast %cst_46 : f32 to vector<2x256xf32>
    %74 = arith.cmpf oge, %72, %73 : vector<2x256xf32>
    %cst_47 = arith.constant 0.00999999977 : f32
    %75 = vector.broadcast %cst_47 : f32 to vector<2x256xf32>
    %76 = arith.mulf %75, %72 : vector<2x256xf32>
    %77 = arith.select %74, %72, %76 : vector<2x256xi1>, vector<2x256xf32>
    %c0_48 = arith.constant 0 : index
    %c0_49 = arith.constant 0 : index
    %78 = vector.load %arg14[%c0_48, %c0_49] : memref<256x4xf32, #tpu.memory_space<vmem>>, vector<256x4xf32>
    %c0_50 = arith.constant 0 : index
    %c0_51 = arith.constant 0 : index
    %79 = vector.load %arg15[%c0_50, %c0_51] : memref<4x256xf32, #tpu.memory_space<vmem>>, vector<4x256xf32>
    %c0_52 = arith.constant 0 : index
    %c0_53 = arith.constant 0 : index
    %80 = vector.load %arg12[%c0_52, %c0_53] : memref<256x256xf32, #tpu.memory_space<vmem>>, vector<256x256xf32>
    %cst_54 = arith.constant dense<0.000000e+00> : vector<2x256xf32>
    %81 = tpu.matmul %77, %80, %cst_54 {dimension_numbers = #tpu.dot_dimension_numbers<[1], [0], [0], [1], [0, 0, 1, 1], [], []>} : vector<2x256xf32>, vector<256x256xf32>, vector<2x256xf32> -> vector<2x256xf32>
    %c0_55 = arith.constant 0 : index
    %c0_56 = arith.constant 0 : index
    %82 = vector.load %arg13[%c0_55, %c0_56] : memref<1x256xf32, #tpu.memory_space<vmem>>, vector<1x256xf32>
    %83 = vector.broadcast %82 : vector<1x256xf32> to vector<2x256xf32>
    %84 = arith.addf %81, %83 : vector<2x256xf32>
    %cst_57 = arith.constant dense<0.000000e+00> : vector<2x4xf32>
    %85 = tpu.matmul %84, %78, %cst_57 {dimension_numbers = #tpu.dot_dimension_numbers<[1], [0], [0], [1], [0, 0, 1, 1], [], []>} : vector<2x256xf32>, vector<256x4xf32>, vector<2x4xf32> -> vector<2x4xf32>
    %86 = arith.mulf %84, %84 : vector<2x256xf32>
    %cst_58 = arith.constant dense<0.000000e+00> : vector<2x4xf32>
    %87 = tpu.matmul %86, %78, %cst_58 {dimension_numbers = #tpu.dot_dimension_numbers<[1], [0], [0], [1], [0, 0, 1, 1], [], []>} : vector<2x256xf32>, vector<256x4xf32>, vector<2x4xf32> -> vector<2x4xf32>
    %cst_59 = arith.constant 0.0270270277 : f32
    %88 = vector.broadcast %cst_59 : f32 to vector<2x4xf32>
    %89 = arith.mulf %85, %88 : vector<2x4xf32>
    %cst_60 = arith.constant 0.0270270277 : f32
    %90 = vector.broadcast %cst_60 : f32 to vector<2x4xf32>
    %91 = arith.mulf %87, %90 : vector<2x4xf32>
    %92 = arith.mulf %89, %89 : vector<2x4xf32>
    %93 = arith.subf %91, %92 : vector<2x4xf32>
    %cst_61 = arith.constant 9.99999974E-6 : f32
    %94 = vector.broadcast %cst_61 : f32 to vector<2x4xf32>
    %95 = arith.addf %93, %94 : vector<2x4xf32>
    %96 = math.rsqrt %95 : vector<2x4xf32>
    %cst_62 = arith.constant dense<0.000000e+00> : vector<2x256xf32>
    %97 = tpu.matmul %89, %79, %cst_62 {dimension_numbers = #tpu.dot_dimension_numbers<[1], [0], [0], [1], [0, 0, 1, 1], [], []>} : vector<2x4xf32>, vector<4x256xf32>, vector<2x256xf32> -> vector<2x256xf32>
    %cst_63 = arith.constant dense<0.000000e+00> : vector<2x256xf32>
    %98 = tpu.matmul %96, %79, %cst_63 {dimension_numbers = #tpu.dot_dimension_numbers<[1], [0], [0], [1], [0, 0, 1, 1], [], []>} : vector<2x4xf32>, vector<4x256xf32>, vector<2x256xf32> -> vector<2x256xf32>
    %99 = arith.subf %84, %97 : vector<2x256xf32>
    %100 = arith.mulf %99, %98 : vector<2x256xf32>
    %cst_64 = arith.constant 0.000000e+00 : f32
    %101 = vector.broadcast %cst_64 : f32 to vector<2x256xf32>
    %102 = arith.cmpf oge, %100, %101 : vector<2x256xf32>
    %cst_65 = arith.constant 0.00999999977 : f32
    %103 = vector.broadcast %cst_65 : f32 to vector<2x256xf32>
    %104 = arith.mulf %103, %100 : vector<2x256xf32>
    %105 = arith.select %102, %100, %104 : vector<2x256xi1>, vector<2x256xf32>
    %cst_66 = arith.constant dense<0.000000e+00> : vector<2x4xf32>
    %106 = tpu.matmul %105, %78, %cst_66 {dimension_numbers = #tpu.dot_dimension_numbers<[1], [0], [0], [1], [0, 0, 1, 1], [], []>} : vector<2x256xf32>, vector<256x4xf32>, vector<2x4xf32> -> vector<2x4xf32>
    %107 = arith.mulf %105, %105 : vector<2x256xf32>
    %cst_67 = arith.constant dense<0.000000e+00> : vector<2x4xf32>
    %108 = tpu.matmul %107, %78, %cst_67 {dimension_numbers = #tpu.dot_dimension_numbers<[1], [0], [0], [1], [0, 0, 1, 1], [], []>} : vector<2x256xf32>, vector<256x4xf32>, vector<2x4xf32> -> vector<2x4xf32>
    %cst_68 = arith.constant 0.0270270277 : f32
    %109 = vector.broadcast %cst_68 : f32 to vector<2x4xf32>
    %110 = arith.mulf %106, %109 : vector<2x4xf32>
    %cst_69 = arith.constant 0.0270270277 : f32
    %111 = vector.broadcast %cst_69 : f32 to vector<2x4xf32>
    %112 = arith.mulf %108, %111 : vector<2x4xf32>
    %113 = arith.mulf %110, %110 : vector<2x4xf32>
    %114 = arith.subf %112, %113 : vector<2x4xf32>
    %cst_70 = arith.constant 9.99999974E-6 : f32
    %115 = vector.broadcast %cst_70 : f32 to vector<2x4xf32>
    %116 = arith.addf %114, %115 : vector<2x4xf32>
    %117 = math.rsqrt %116 : vector<2x4xf32>
    %cst_71 = arith.constant dense<0.000000e+00> : vector<2x256xf32>
    %118 = tpu.matmul %110, %79, %cst_71 {dimension_numbers = #tpu.dot_dimension_numbers<[1], [0], [0], [1], [0, 0, 1, 1], [], []>} : vector<2x4xf32>, vector<4x256xf32>, vector<2x256xf32> -> vector<2x256xf32>
    %cst_72 = arith.constant dense<0.000000e+00> : vector<2x256xf32>
    %119 = tpu.matmul %117, %79, %cst_72 {dimension_numbers = #tpu.dot_dimension_numbers<[1], [0], [0], [1], [0, 0, 1, 1], [], []>} : vector<2x4xf32>, vector<4x256xf32>, vector<2x256xf32> -> vector<2x256xf32>
    %120 = arith.subf %105, %118 : vector<2x256xf32>
    %121 = arith.mulf %120, %119 : vector<2x256xf32>
    %c0_73 = arith.constant 0 : index
    %c0_74 = arith.constant 0 : index
    %122 = vector.load %arg18[%c0_73, %c0_74] : memref<256x4xf32, #tpu.memory_space<vmem>>, vector<256x4xf32>
    %c0_75 = arith.constant 0 : index
    %c0_76 = arith.constant 0 : index
    %123 = vector.load %arg19[%c0_75, %c0_76] : memref<4x256xf32, #tpu.memory_space<vmem>>, vector<4x256xf32>
    %c0_77 = arith.constant 0 : index
    %c0_78 = arith.constant 0 : index
    %124 = vector.load %arg16[%c0_77, %c0_78] : memref<256x256xf32, #tpu.memory_space<vmem>>, vector<256x256xf32>
    %cst_79 = arith.constant dense<0.000000e+00> : vector<2x256xf32>
    %125 = tpu.matmul %121, %124, %cst_79 {dimension_numbers = #tpu.dot_dimension_numbers<[1], [0], [0], [1], [0, 0, 1, 1], [], []>} : vector<2x256xf32>, vector<256x256xf32>, vector<2x256xf32> -> vector<2x256xf32>
    %c0_80 = arith.constant 0 : index
    %c0_81 = arith.constant 0 : index
    %126 = vector.load %arg17[%c0_80, %c0_81] : memref<1x256xf32, #tpu.memory_space<vmem>>, vector<1x256xf32>
    %127 = vector.broadcast %126 : vector<1x256xf32> to vector<2x256xf32>
    %128 = arith.addf %125, %127 : vector<2x256xf32>
    %cst_82 = arith.constant dense<0.000000e+00> : vector<2x4xf32>
    %129 = tpu.matmul %128, %122, %cst_82 {dimension_numbers = #tpu.dot_dimension_numbers<[1], [0], [0], [1], [0, 0, 1, 1], [], []>} : vector<2x256xf32>, vector<256x4xf32>, vector<2x4xf32> -> vector<2x4xf32>
    %130 = arith.mulf %128, %128 : vector<2x256xf32>
    %cst_83 = arith.constant dense<0.000000e+00> : vector<2x4xf32>
    %131 = tpu.matmul %130, %122, %cst_83 {dimension_numbers = #tpu.dot_dimension_numbers<[1], [0], [0], [1], [0, 0, 1, 1], [], []>} : vector<2x256xf32>, vector<256x4xf32>, vector<2x4xf32> -> vector<2x4xf32>
    %cst_84 = arith.constant 0.0270270277 : f32
    %132 = vector.broadcast %cst_84 : f32 to vector<2x4xf32>
    %133 = arith.mulf %129, %132 : vector<2x4xf32>
    %cst_85 = arith.constant 0.0270270277 : f32
    %134 = vector.broadcast %cst_85 : f32 to vector<2x4xf32>
    %135 = arith.mulf %131, %134 : vector<2x4xf32>
    %136 = arith.mulf %133, %133 : vector<2x4xf32>
    %137 = arith.subf %135, %136 : vector<2x4xf32>
    %cst_86 = arith.constant 9.99999974E-6 : f32
    %138 = vector.broadcast %cst_86 : f32 to vector<2x4xf32>
    %139 = arith.addf %137, %138 : vector<2x4xf32>
    %140 = math.rsqrt %139 : vector<2x4xf32>
    %cst_87 = arith.constant dense<0.000000e+00> : vector<2x256xf32>
    %141 = tpu.matmul %133, %123, %cst_87 {dimension_numbers = #tpu.dot_dimension_numbers<[1], [0], [0], [1], [0, 0, 1, 1], [], []>} : vector<2x4xf32>, vector<4x256xf32>, vector<2x256xf32> -> vector<2x256xf32>
    %cst_88 = arith.constant dense<0.000000e+00> : vector<2x256xf32>
    %142 = tpu.matmul %140, %123, %cst_88 {dimension_numbers = #tpu.dot_dimension_numbers<[1], [0], [0], [1], [0, 0, 1, 1], [], []>} : vector<2x4xf32>, vector<4x256xf32>, vector<2x256xf32> -> vector<2x256xf32>
    %143 = arith.subf %128, %141 : vector<2x256xf32>
    %144 = arith.mulf %143, %142 : vector<2x256xf32>
    %cst_89 = arith.constant 0.000000e+00 : f32
    %145 = vector.broadcast %cst_89 : f32 to vector<2x256xf32>
    %146 = arith.cmpf oge, %144, %145 : vector<2x256xf32>
    %cst_90 = arith.constant 0.00999999977 : f32
    %147 = vector.broadcast %cst_90 : f32 to vector<2x256xf32>
    %148 = arith.mulf %147, %144 : vector<2x256xf32>
    %149 = arith.select %146, %144, %148 : vector<2x256xi1>, vector<2x256xf32>
    %c0_91 = arith.constant 0 : index
    %c0_92 = arith.constant 0 : index
    %150 = vector.load %arg20[%c0_91, %c0_92] : memref<2x256xf32, #tpu.memory_space<vmem>>, vector<2x256xf32>
    tpu.vector_store %arg20[%c0_91, %c0_92], %149 {strides = array<i32>} : memref<2x256xf32, #tpu.memory_space<vmem>>, vector<2x256xf32>,
    return
  }
  func.func @transform_0(%arg0: i32) -> (i32, i32) {
    %c0_i32 = arith.constant 0 : i32
    %c0_i32_0 = arith.constant 0 : i32
    %c0_i32_1 = arith.constant 0 : i32
    return %c0_i32, %c0_i32_0 : i32, i32
  }
  func.func @transform_1(%arg0: i32) -> (i32, i32) {
    %c0_i32 = arith.constant 0 : i32
    %c0_i32_0 = arith.constant 0 : i32
    %c0_i32_1 = arith.constant 0 : i32
    return %c0_i32, %c0_i32_0 : i32, i32
  }
  func.func @transform_2(%arg0: i32) -> (i32, i32) {
    %c0_i32 = arith.constant 0 : i32
    %c0_i32_0 = arith.constant 0 : i32
    %c0_i32_1 = arith.constant 0 : i32
    return %c0_i32, %c0_i32_0 : i32, i32
  }
  func.func @transform_3(%arg0: i32) -> (i32, i32) {
    %c0_i32 = arith.constant 0 : i32
    %c0_i32_0 = arith.constant 0 : i32
    %c0_i32_1 = arith.constant 0 : i32
    return %c0_i32, %c0_i32_0 : i32, i32
  }
  func.func @transform_4(%arg0: i32) -> (i32, i32) {
    %c0_i32 = arith.constant 0 : i32
    %c0_i32_0 = arith.constant 0 : i32
    %c0_i32_1 = arith.constant 0 : i32
    return %c0_i32, %c0_i32_0 : i32, i32
  }
  func.func @transform_5(%arg0: i32) -> (i32, i32) {
    %c0_i32 = arith.constant 0 : i32
    %c0_i32_0 = arith.constant 0 : i32
    %c0_i32_1 = arith.constant 0 : i32
    return %c0_i32, %c0_i32_0 : i32, i32
  }
  func.func @transform_6(%arg0: i32) -> (i32, i32) {
    %c0_i32 = arith.constant 0 : i32
    %c0_i32_0 = arith.constant 0 : i32
    %c0_i32_1 = arith.constant 0 : i32
    return %c0_i32, %c0_i32_0 : i32, i32
  }
  func.func @transform_7(%arg0: i32) -> (i32, i32) {
    %c0_i32 = arith.constant 0 : i32
    %c0_i32_0 = arith.constant 0 : i32
    %c0_i32_1 = arith.constant 0 : i32
    return %c0_i32, %c0_i32_0 : i32, i32
  }
  func.func @transform_8(%arg0: i32) -> (i32, i32) {
    %c0_i32 = arith.constant 0 : i32
    %c0_i32_0 = arith.constant 0 : i32
    %c0_i32_1 = arith.constant 0 : i32
    return %c0_i32, %c0_i32_0 : i32, i32
  }
  func.func @transform_9(%arg0: i32) -> (i32, i32) {
    %c0_i32 = arith.constant 0 : i32
    %c0_i32_0 = arith.constant 0 : i32
    %c0_i32_1 = arith.constant 0 : i32
    return %c0_i32, %c0_i32_0 : i32, i32
  }
  func.func @transform_10(%arg0: i32) -> (i32, i32) {
    %c0_i32 = arith.constant 0 : i32
    %c0_i32_0 = arith.constant 0 : i32
    %c0_i32_1 = arith.constant 0 : i32
    return %c0_i32, %c0_i32_0 : i32, i32
  }
  func.func @transform_11(%arg0: i32) -> (i32, i32) {
    %c0_i32 = arith.constant 0 : i32
    %c0_i32_0 = arith.constant 0 : i32
    %c0_i32_1 = arith.constant 0 : i32
    return %c0_i32, %c0_i32_0 : i32, i32
  }
  func.func @transform_12(%arg0: i32) -> (i32, i32) {
    %c0_i32 = arith.constant 0 : i32
    %c0_i32_0 = arith.constant 0 : i32
    %c0_i32_1 = arith.constant 0 : i32
    return %c0_i32, %c0_i32_0 : i32, i32
  }
  func.func @transform_13(%arg0: i32) -> (i32, i32) {
    %c0_i32 = arith.constant 0 : i32
    %c0_i32_0 = arith.constant 0 : i32
    %c0_i32_1 = arith.constant 0 : i32
    return %c0_i32, %c0_i32_0 : i32, i32
  }
  func.func @transform_14(%arg0: i32) -> (i32, i32) {
    %c0_i32 = arith.constant 0 : i32
    %c0_i32_0 = arith.constant 0 : i32
    %c0_i32_1 = arith.constant 0 : i32
    return %c0_i32, %c0_i32_0 : i32, i32
  }
  func.func @transform_15(%arg0: i32) -> (i32, i32) {
    %c0_i32 = arith.constant 0 : i32
    %c0_i32_0 = arith.constant 0 : i32
    %c0_i32_1 = arith.constant 0 : i32
    return %c0_i32, %c0_i32_0 : i32, i32
  }
  func.func @transform_16(%arg0: i32) -> (i32, i32) {
    %c0_i32 = arith.constant 0 : i32
    %c0_i32_0 = arith.constant 0 : i32
    %c0_i32_1 = arith.constant 0 : i32
    return %c0_i32, %c0_i32_0 : i32, i32
  }
  func.func @transform_17(%arg0: i32) -> (i32, i32) {
    %c0_i32 = arith.constant 0 : i32
    %c0_i32_0 = arith.constant 0 : i32
    %c0_i32_1 = arith.constant 0 : i32
    return %c0_i32, %c0_i32_0 : i32, i32
  }
  func.func @transform_18(%arg0: i32) -> (i32, i32) {
    %c0_i32 = arith.constant 0 : i32
    %c0_i32_0 = arith.constant 0 : i32
    %c0_i32_1 = arith.constant 0 : i32
    return %c0_i32, %c0_i32_0 : i32, i32
  }
  func.func @transform_19(%arg0: i32) -> (i32, i32) {
    %c0_i32 = arith.constant 0 : i32
    %c0_i32_0 = arith.constant 0 : i32
    %c0_i32_1 = arith.constant 0 : i32
    return %c0_i32, %c0_i32_0 : i32, i32
  }
}

</mosaic_0001>

<bundles_post_ra>
// kernel: forward.1
= control target key start
LH: loop header
LB: loop body
LE: loop exit
PB: predicated region body
PF: predicated region fallthrough
CT: control target
= control target key end

     0   :  { %s3343_s0 = inlined_call_operand.hbm [shape: f32[2,32], index: 0, kind: input, shape index: {}]   ;;  %s3344_s1 = inlined_call_operand.hbm [shape: f32[32,128], index: 1, kind: input, shape index: {}]   ;;  %s3345_s2 = inlined_call_operand.hbm [shape: f32[1,128], index: 2, kind: input, shape index: {}]   ;;  %s3346_s3 = inlined_call_operand.hbm [shape: f32[128,256], index: 3, kind: input, shape index: {}]   ;;  %s3347_s4 = inlined_call_operand.hbm [shape: f32[1,256], index: 4, kind: input, shape index: {}]   ;;  %s3348_s5 = inlined_call_operand.hbm [shape: f32[256,8], index: 5, kind: input, shape index: {}]   ;;  %s3349_s6 = inlined_call_operand.hbm [shape: f32[8,256], index: 6, kind: input, shape index: {}]   ;;  %s3350_s7 = inlined_call_operand.hbm [shape: f32[256,256], index: 7, kind: input, shape index: {}]   ;;  %s3351_s8 = inlined_call_operand.hbm [shape: f32[1,256], index: 8, kind: input, shape index: {}]   ;;  %s3352_s9 = inlined_call_operand.hbm [shape: f32[256,8], index: 9, kind: input, shape index: {}]   ;;  %s3353_s10 = inlined_call_operand.hbm [shape: f32[8,256], index: 10, kind: input, shape index: {}]   ;;  %s3354_s11 = inlined_call_operand.hbm [shape: f32[256,256], index: 11, kind: input, shape index: {}]   ;;  %s3355_s12 = inlined_call_operand.vmem [shape: f32[1,256], index: 12, kind: input, shape index: {}]   ;;  %s3356_s13 = inlined_call_operand.hbm [shape: f32[256,4], index: 13, kind: input, shape index: {}, may-alias: {13,17}]   ;;  %s3357_s14 = inlined_call_operand.vmem [shape: f32[4,256], index: 14, kind: input, shape index: {}, may-alias: {14,18}]   ;;  %s3358_s15 = inlined_call_operand.hbm [shape: f32[256,256], index: 15, kind: input, shape index: {}]   ;;  %s3359_s16 = inlined_call_operand.vmem [shape: f32[1,256], index: 16, kind: input, shape index: {}]   ;;  %s3360_s17 = inlined_call_operand.hbm [shape: f32[256,4], index: 17, kind: input, shape index: {}, may-alias: {13,17}]   ;;  %s3361_s18 = inlined_call_operand.vmem [shape: f32[4,256], index: 18, kind: input, shape index: {}, may-alias: {14,18}]   ;;  %s3362_s19 = inlined_call_operand.vmem [shape: f32[2,256], index: 19, kind: output, shape index: {}]  }
   0x1   :  { %3363 = sst [smem:[#allocation33_spill]] %s3343_s0 }
   0x2   :  { %3364 = sst [smem:[#allocation34_spill]] %s3344_s1 }
   0x3   :  { %3365 = sst [smem:[#allocation35_spill]] %s3345_s2 }
   0x4   :  { %3366 = sst [smem:[#allocation36_spill]] %s3346_s3 }
   0x5   :  { %3367 = sst [smem:[#allocation37_spill]] %s3362_s19 }
   0x6   :  { %24 = vsyncpa [#allocation3], 0 }
   0x7   :  { %25 = vsyncpa [#allocation5], 0 }
   0x8   :  { %26 = vsyncpa [#allocation8], 0 }
   0x9   :  { %27 = vsyncpa [#allocation11], 0 }
   0xa   :  { %28 = vsyncpa [#allocation14], 0 }
   0xb   :  { %29 = vsyncpa [#allocation17], 0 }
   0xc   :  { %30 = vsyncpa [#allocation20], 0  ;;  %s3368_s20 = sld [smem:[#allocation34_spill]] }
  0x12   :  { %s47_s21 = sshll.u32 %s3368_s20, 4  ;;  %s48_s21 = int_to_ptr.hbm [resolvable:$true] %s47_s21 }
  0x13   :  { %31 = vsyncpa [#allocation23], 0  ;;  %s2635_s1 = smov [#allocation4]   ;;  %s3369_s24 = sld [smem:[#allocation36_spill]] }
  0x14   :  { %s49_s22 = sshll.u32 %s2635_s1, 4  ;;  %s2636_s3 = smov 128   ;;  %s50_s22 = int_to_ptr.vmem [resolvable:$true] %s49_s22 }
  0x15   :  { %s2637_s26 = smov 8   ;;  %s2638_s27 = smov [#allocation7]  }
  0x16   :  { %55 = dma.hbm_to_vmem [thread:$0]  %s48_s21, 512, %s50_s22, [#allocation5], %s2636_s3, %s2636_s3, %s2637_s26  }
  0x17   :  { %s73_s28 = sshll.u32 %s2638_s27, 4  ;;  %s2639_s29 = smov 256   ;;  %s74_s28 = int_to_ptr.vmem [resolvable:$true] %s73_s28 }
  0x18   :  { %s2640_s0 = smov 16   ;;  %s95_s1 = sshll.u32 %s3348_s5, 4  ;;  %s96_s1 = int_to_ptr.hbm [resolvable:$true] %s95_s1 }
  0x19   :  { %s71_s25 = sshll.u32 %s3369_s24, 4  ;;  %s2641_s2 = smov [#allocation10]   ;;  %s72_s25 = int_to_ptr.hbm [resolvable:$true] %s71_s25 }
  0x1a   :  { %79 = dma.hbm_to_vmem [thread:$0]  %s72_s25, 4096, %s74_s28, [#allocation8], %s2639_s29, %s2639_s29, %s2640_s0  }
  0x1b   :  { %s97_s23 = sshll.u32 %s2641_s2, 4  ;;  %s119_s22 = sshll.u32 %s3350_s7, 4  ;;  %s98_s23 = int_to_ptr.vmem [resolvable:$true] %s97_s23  ;;  %s120_s22 = int_to_ptr.hbm [resolvable:$true] %s119_s22 }
  0x1c   :  { %103 = dma.hbm_to_vmem [thread:$0]  %s96_s1, 4096, %s98_s23, [#allocation11], %s2636_s3, %s2636_s3, %s2637_s26  }
  0x1d   :  { %s2642_s27 = smov [#allocation13]   ;;  %s143_s30 = sshll.u32 %s3352_s9, 4  ;;  %s144_s30 = int_to_ptr.hbm [resolvable:$true] %s143_s30 }
  0x1e   :  { %s121_s19 = sshll.u32 %s2642_s27, 4  ;;  %s167_s7 = sshll.u32 %s3354_s11, 4  ;;  %s122_s19 = int_to_ptr.vmem [resolvable:$true] %s121_s19  ;;  %s168_s7 = int_to_ptr.hbm [resolvable:$true] %s167_s7 }
  0x1f   :  { %127 = dma.hbm_to_vmem [thread:$0]  %s120_s22, 8192, %s122_s19, [#allocation14], %s2639_s29, %s2639_s29, %s2640_s0  }
  0x20   :  { %s2643_s2 = smov [#allocation16]   ;;  %s2644_s1 = smov [#allocation19]  }
  0x21   :  { %s145_s24 = sshll.u32 %s2643_s2, 4  ;;  %s169_s9 = sshll.u32 %s2644_s1, 4  ;;  %s146_s24 = int_to_ptr.vmem [resolvable:$true] %s145_s24  ;;  %s170_s9 = int_to_ptr.vmem [resolvable:$true] %s169_s9 }
  0x22   :  { %151 = dma.hbm_to_vmem [thread:$0]  %s144_s30, 4096, %s146_s24, [#allocation17], %s2636_s3, %s2636_s3, %s2637_s26  }
  0x23   :  { %s197_s27 = sshll.u32 %s3358_s15, 4  ;;  %s3370_s22 = sld [smem:[#allocation33_spill]]  ;;  %s198_s27 = int_to_ptr.hbm [resolvable:$true] %s197_s27 }
  0x24   :  { %175 = dma.hbm_to_vmem [thread:$0]  %s168_s7, 8192, %s170_s9, [#allocation20], %s2639_s29, %s2639_s29, %s2640_s0  }
  0x25   :  { %s2645_s28 = smov [#allocation22]   ;;  %s2646_s30 = smov [#allocation2]  }
  0x26   :  { %s199_s5 = sshll.u32 %s2645_s28, 4  ;;  %s39_s15 = sshll.u32 %s2646_s30, 4  ;;  %s200_s5 = int_to_ptr.vmem [resolvable:$true] %s199_s5  ;;  %s40_s15 = int_to_ptr.vmem [resolvable:$true] %s39_s15 }
  0x27   :  { %205 = dma.hbm_to_vmem [thread:$0]  %s198_s27, 8192, %s200_s5, [#allocation23], %s2639_s29, %s2639_s29, %s2640_s0  }
  0x28   :  { %s3371_s24 = sld [smem:[#allocation35_spill]]  ;;  %s85_s23 = sshll.u32 %s3347_s4, 4  ;;  %s86_s23 = int_to_ptr.hbm [resolvable:$true] %s85_s23 }
  0x29   :  { %s37_s25 = sshll.u32 %s3370_s22, 4  ;;  %s2647_s21 = smov [#allocation6]   ;;  %s38_s25 = int_to_ptr.hbm [resolvable:$true] %s37_s25 }
  0x2a   :  { %42 = dma.hbm_to_vmem [thread:$0]  %s38_s25, 32, %s40_s15, [#allocation3]  }
  0x2b   :  { %s63_s11 = sshll.u32 %s2647_s21, 4  ;;  %s2648_s19 = smov [#allocation9]   ;;  %s64_s11 = int_to_ptr.vmem [resolvable:$true] %s63_s11 }
  0x2c   :  { %s87_s29 = sshll.u32 %s2648_s19, 4  ;;  %s109_s22 = sshll.u32 %s3349_s6, 4  ;;  %s88_s29 = int_to_ptr.vmem [resolvable:$true] %s87_s29  ;;  %s110_s22 = int_to_ptr.hbm [resolvable:$true] %s109_s22 }
  0x2d   :  { %90 = dma.hbm_to_vmem [thread:$0]  %s86_s23, 32, %s88_s29, [#allocation8]  }
  0x2e   :  { %s61_s1 = sshll.u32 %s3371_s24, 4  ;;  %s133_s5 = sshll.u32 %s3351_s8, 4  ;;  %s62_s1 = int_to_ptr.hbm [resolvable:$true] %s61_s1  ;;  %s134_s5 = int_to_ptr.hbm [resolvable:$true] %s133_s5 }
  0x2f   :  { %66 = dma.hbm_to_vmem [thread:$0]  %s62_s1, 16, %s64_s11, [#allocation5]  }
  0x30   :  { %s2649_s30 = smov [#allocation12]   ;;  %s2650_s15 = smov [#allocation15]  }
  0x31   :  { %s111_s4 = sshll.u32 %s2649_s30, 4  ;;  %s135_s20 = sshll.u32 %s2650_s15, 4  ;;  %s112_s4 = int_to_ptr.vmem [resolvable:$true] %s111_s4  ;;  %s136_s20 = int_to_ptr.vmem [resolvable:$true] %s135_s20 }
  0x32   :  { %114 = dma.hbm_to_vmem [thread:$0]  %s110_s22, 256, %s112_s4, [#allocation11]  }
  0x33   :  { %s157_s1 = sshll.u32 %s3353_s10, 4  ;;  %s182_s9 = sshll.u32 %s3356_s13, 4  ;;  %s158_s1 = int_to_ptr.hbm [resolvable:$true] %s157_s1  ;;  %s183_s9 = int_to_ptr.hbm [resolvable:$true] %s182_s9 }
  0x34   :  { %138 = dma.hbm_to_vmem [thread:$0]  %s134_s5, 32, %s136_s20, [#allocation14]  }
  0x35   :  { %s2651_s23 = smov [#allocation18]   ;;  %s2652_s21 = smov [#allocation21]  }
  0x36   :  { %s159_s8 = sshll.u32 %s2651_s23, 4  ;;  %s184_s11 = sshll.u32 %s2652_s21, 4  ;;  %s160_s8 = int_to_ptr.vmem [resolvable:$true] %s159_s8  ;;  %s185_s11 = int_to_ptr.vmem [resolvable:$true] %s184_s11 }
  0x37   :  { %162 = dma.hbm_to_vmem [thread:$0]  %s158_s1, 256, %s160_s8, [#allocation17]  }
  0x38   :  { %s212_s0 = sshll.u32 %s3360_s17, 4  ;;  %s2653_s10 = smov [#allocation24]   ;;  %s213_s0 = int_to_ptr.hbm [resolvable:$true] %s212_s0 }
  0x39   :  { %190 = dma.hbm_to_vmem [thread:$0]  %s183_s9, 4096, %s185_s11, [#allocation20], %s2636_s3, %s2636_s3, %s2637_s26  }
  0x3a   :  { %s214_s27 = sshll.u32 %s2653_s10, 4  ;;  %s215_s27 = int_to_ptr.vmem [resolvable:$true] %s214_s27 }
  0x3b   :  { %220 = dma.hbm_to_vmem [thread:$0]  %s213_s0, 4096, %s215_s27, [#allocation23], %s2636_s3, %s2636_s3, %s2637_s26  }
  0x3c   :  { %2619 = dma.done.wait [#allocation3], 32  }
  0x3d   :  { %2620 = vsyncadd [#allocation3], 4294967264 }
  0x3e   :  { %2621 = dma.done.wait [#allocation5], 528  }
  0x3f   :  { %2622 = vsyncadd [#allocation5], 4294966768 }
  0x40   :  { %2623 = dma.done.wait [#allocation8], 4128  }
  0x41   :  { %2624 = vsyncadd [#allocation8], 4294963168 }
  0x42   :  { %2625 = dma.done.wait [#allocation11], 4352  }
  0x43   :  { %2626 = vsyncadd [#allocation11], 4294962944 }
  0x44   :  { %2627 = dma.done.wait [#allocation14], 8224  }
  0x45   :  { %2628 = vsyncadd [#allocation14], 4294959072 }
  0x46   :  { %2629 = dma.done.wait [#allocation17], 4352  }
  0x47   :  { %2630 = vsyncadd [#allocation17], 4294962944 }
  0x48   :  { %2631 = dma.done.wait [#allocation20], 12288  }
  0x49   :  { %2632 = vsyncadd [#allocation20], 4294955008 }
  0x4a   :  { %2633 = dma.done.wait [#allocation23], 12288  }
  0x4b   :  { %2634 = vsyncadd [#allocation23], 4294955008  ;;  %v287_v0 = vld [vmem:[#allocation4 + $0x18] sm:$0xff]  ;;  %v286_v1 = vld [vmem:[#allocation4 + $0x10] sm:$0xff]  ;;  %vm292_vm0 = vcmask 261120   ;;  %vm525_vm1 = vcmask 64512  }
  0x4c   :  { %308 = vmatpush.msra.mxu0 %v287_v0  ;;  %v285_v2 = vld [vmem:[#allocation4 + $0x8] sm:$0xff]  ;;  %v380_v3 = vld [vmem:[#allocation7 + $0xf0] sm:$0xff]  ;;  %v381_v4 = vld [vmem:[#allocation7 + $0xf8] sm:$0xff]  ;;  %vm1474_vm15 = vcmask 1043456   ;;  %s3372_s25 = sld [smem:[#allocation37_spill]] }
  0x4d   :  { %388 = vmatpush.msra.mxu1 %v380_v3  ;;  %v378_v5 = vld [vmem:[#allocation7 + $0xe0] sm:$0xff]  ;;  %v379_v6 = vld [vmem:[#allocation7 + $0xe8] sm:$0xff]  ;;  %408 = vmatpush.msra.mxu2 %v381_v4  ;;  %v376_v7 = vld [vmem:[#allocation7 + $0xd0] sm:$0xff] }
  0x4e   :  { %309 = vmatpush.msra.mxu0 %v286_v1  ;;  %v284_v8 = vld [vmem:[#allocation4] sm:$0xff]  ;;  %v283_v10 = vld [vmem:[#allocation2] sm:$0x3]  ;;  %v375_v12 = vld [vmem:[#allocation7 + $0xc8] sm:$0xff] }
  0x4f   :  { %389 = vmatpush.msra.mxu1 %v378_v5  ;;  %v377_v9 = vld [vmem:[#allocation7 + $0xd8] sm:$0xff]  ;;  %409 = vmatpush.msra.mxu2 %v379_v6  ;;  %v374_v11 = vld [vmem:[#allocation7 + $0xc0] sm:$0xff]  ;;  %v372_v13 = vld [vmem:[#allocation7 + $0xb0] sm:$0xff] }
  0x50   :  { %310 = vmatpush.msra.mxu0 %v285_v2  ;;  %v373_v14 = vld [vmem:[#allocation7 + $0xb8] sm:$0xff]  ;;  %v370_v15 = vld [vmem:[#allocation7 + $0xa0] sm:$0xff]  ;;  %v371_v16 = vld [vmem:[#allocation7 + $0xa8] sm:$0xff] }
  0x51   :  { %390 = vmatpush.msra.mxu1 %v376_v7  ;;  %410 = vmatpush.msra.mxu2 %v377_v9  ;;  %v368_v17 = vld [vmem:[#allocation7 + $0x90] sm:$0xff]  ;;  %v369_v18 = vld [vmem:[#allocation7 + $0x98] sm:$0xff]  ;;  %v366_v19 = vld [vmem:[#allocation7 + $0x80] sm:$0xff] }
  0x52   :  { %311 = vmatpush.msra.mxu0 %v284_v8  ;;  %v367_v20 = vld [vmem:[#allocation7 + $0x88] sm:$0xff]  ;;  %v364_v21 = vld [vmem:[#allocation7 + $0x70] sm:$0xff]  ;;  %v365_v22 = vld [vmem:[#allocation7 + $0x78] sm:$0xff] }
  0x53   :  { %2190 = vmatmul.msk.f32.vlgmr.msra.gmra.mxu0 %vm292_vm0, %v283_v10  ;;  %391 = vmatpush.msra.mxu1 %v374_v11  ;;  %v362_v23 = vld [vmem:[#allocation7 + $0x60] sm:$0xff]  ;;  %v363_v24 = vld [vmem:[#allocation7 + $0x68] sm:$0xff]  ;;  %v360_v25 = vld [vmem:[#allocation7 + $0x50] sm:$0xff]  ;;  %vm1470_vm0 = vcmask 31744  }
  0x54   :  { %411 = vmatpush.msra.mxu2 %v375_v12  ;;  %v361_v26 = vld [vmem:[#allocation7 + $0x58] sm:$0xff]  ;;  %v358_v27 = vld [vmem:[#allocation7 + $0x40] sm:$0xff]  ;;  %v359_v28 = vld [vmem:[#allocation7 + $0x48] sm:$0xff] }
  0x55   :  { %392 = vmatpush.msra.mxu1 %v372_v13  ;;  %v356_v29 = vld [vmem:[#allocation7 + $0x30] sm:$0xff]  ;;  %v357_v30 = vld [vmem:[#allocation7 + $0x38] sm:$0xff]  ;;  %v354_v31 = vld [vmem:[#allocation7 + $0x20] sm:$0xff] }
  0x56   :  { %412 = vmatpush.msra.mxu2 %v373_v14  ;;  %v355_v32 = vld [vmem:[#allocation7 + $0x28] sm:$0xff]  ;;  %v352_v33 = vld [vmem:[#allocation7 + $0x10] sm:$0xff]  ;;  %v353_v34 = vld [vmem:[#allocation7 + $0x18] sm:$0xff] }
  0x57   :  { %393 = vmatpush.msra.mxu1 %v370_v15  ;;  %v350_v35 = vld [vmem:[#allocation7] sm:$0xff]  ;;  %v351_v36 = vld [vmem:[#allocation7 + $0x8] sm:$0xff]  ;;  %v2828_v38 = vld [vmem:[#allocation10 + $0x70] sm:$0xff] }
  0x58   :  { %413 = vmatpush.msra.mxu2 %v371_v16  ;;  %v2826_v37 = vld [vmem:[#allocation10 + $0x78] sm:$0xff]  ;;  %v2834_v40 = vld [vmem:[#allocation10 + $0x68] sm:$0xff]  ;;  %v2837_v41 = vld [vmem:[#allocation10 + $0xf0] sm:$0xff] }
  0x59   :  { %394 = vmatpush.msra.mxu1 %v368_v17  ;;  %428 = vmatpush.msra.mxu3 %v2826_v37  ;;  %v2832_v39 = vld [vmem:[#allocation10 + $0xf8] sm:$0xff]  ;;  %v2842_v42 = vld [vmem:[#allocation10 + $0xe8] sm:$0xff]  ;;  %v2844_v43 = vld [vmem:[#allocation10 + $0x60] sm:$0xff] }
  0x5a   :  { %414 = vmatpush.msra.mxu2 %v369_v18  ;;  %448 = vmatpush.msrb.mxu0 %v2832_v39  ;;  %v2850_v44 = vld [vmem:[#allocation10 + $0xe0] sm:$0xff]  ;;  %v2852_v45 = vld [vmem:[#allocation10 + $0x58] sm:$0xff]  ;;  %v2860_v47 = vld [vmem:[#allocation10 + $0x50] sm:$0xff] }
  0x5b   :  { %395 = vmatpush.msra.mxu1 %v366_v19  ;;  %429 = vmatpush.msra.mxu3 %v2828_v38  ;;  %v2858_v46 = vld [vmem:[#allocation10 + $0xd8] sm:$0xff]  ;;  %v2866_v48 = vld [vmem:[#allocation10 + $0xd0] sm:$0xff]  ;;  %v2868_v49 = vld [vmem:[#allocation10 + $0x48] sm:$0xff] }
  0x5c   :  { %415 = vmatpush.msra.mxu2 %v367_v20  ;;  %449 = vmatpush.msrb.mxu0 %v2837_v41  ;;  %v2874_v50 = vld [vmem:[#allocation10 + $0xc8] sm:$0xff]  ;;  %v2876_v51 = vld [vmem:[#allocation10 + $0x40] sm:$0xff]  ;;  %v2884_v53 = vld [vmem:[#allocation10 + $0x38] sm:$0xff] }
  0x5d   :  { %396 = vmatpush.msra.mxu1 %v364_v21  ;;  %430 = vmatpush.msra.mxu3 %v2834_v40  ;;  %v2882_v52 = vld [vmem:[#allocation10 + $0xc0] sm:$0xff]  ;;  %v2890_v54 = vld [vmem:[#allocation10 + $0xb8] sm:$0xff]  ;;  %v2892_v55 = vld [vmem:[#allocation10 + $0x30] sm:$0xff] }
  0x5e   :  { %416 = vmatpush.msra.mxu2 %v365_v22  ;;  %450 = vmatpush.msrb.mxu0 %v2842_v42  ;;  %v2898_v56 = vld [vmem:[#allocation10 + $0xb0] sm:$0xff]  ;;  %v2900_v57 = vld [vmem:[#allocation10 + $0x28] sm:$0xff]  ;;  %v2908_v59 = vld [vmem:[#allocation10 + $0x20] sm:$0xff] }
  0x5f   :  { %397 = vmatpush.msra.mxu1 %v362_v23  ;;  %431 = vmatpush.msra.mxu3 %v2844_v43  ;;  %v2906_v58 = vld [vmem:[#allocation10 + $0xa8] sm:$0xff]  ;;  %v2914_v60 = vld [vmem:[#allocation10 + $0x18] sm:$0xff]  ;;  %v2920_v61 = vld [vmem:[#allocation10 + $0x10] sm:$0xff] }
  0x60   :  { %417 = vmatpush.msra.mxu2 %v363_v24  ;;  %451 = vmatpush.msrb.mxu0 %v2850_v44  ;;  %v2246_v62 = vld [vmem:[#allocation6] ss:$0 sm:$0xff]  ;;  %v2926_v1 = vld [vmem:[#allocation10 + $0x8] sm:$0xff]  ;;  %v2928_v2 = vld [vmem:[#allocation10 + $0xa0] sm:$0xff] }
  0x61   :  { %398 = vmatpush.msra.mxu1 %v360_v25  ;;  %432 = vmatpush.msra.mxu3 %v2852_v45  ;;  %v2932_v3 = vld [vmem:[#allocation10] sm:$0xff]  ;;  %v2934_v4 = vld [vmem:[#allocation10 + $0x98] sm:$0xff]  ;;  %v2940_v5 = vld [vmem:[#allocation10 + $0x90] sm:$0xff] }
  0x62   :  { %418 = vmatpush.msra.mxu2 %v361_v26  ;;  %452 = vmatpush.msrb.mxu0 %v2858_v46  ;;  %v2946_v6 = vld [vmem:[#allocation10 + $0x88] sm:$0xff]  ;;  %v2951_v7 = vld [vmem:[#allocation10 + $0x80] sm:$0xff]  ;;  %v382_v8 = vld [vmem:[#allocation9] sm:$0x3] }
  0x63   :  { %399 = vmatpush.msra.mxu1 %v358_v27  ;;  %433 = vmatpush.msra.mxu3 %v2860_v47  ;;  %v384_v9 = vperm.slane %v382_v8, 0  ;;  %v385_v13 = vperm.slane %v382_v8, 1  ;;  %v2996_v17 = vld [vmem:[#allocation12] sm:$0xff]  ;;  %v2998_v18 = vld [vmem:[#allocation12 + $0x8] sm:$0xff] }
  0x64   :  { %419 = vmatpush.msra.mxu2 %v359_v28  ;;  %453 = vmatpush.msrb.mxu0 %v2866_v48 }
  0x65   :  { %400 = vmatpush.msra.mxu1 %v356_v29  ;;  %434 = vmatpush.msra.mxu3 %v2868_v49 }
  0x66   :  { %420 = vmatpush.msra.mxu2 %v357_v30  ;;  %454 = vmatpush.msrb.mxu0 %v2874_v50 }
  0x67   :  { %401 = vmatpush.msra.mxu1 %v354_v31  ;;  %435 = vmatpush.msra.mxu3 %v2876_v51 }
  0x68   :  { %421 = vmatpush.msra.mxu2 %v355_v32  ;;  %455 = vmatpush.msrb.mxu0 %v2882_v52 }
  0x69   :  { %402 = vmatpush.msra.mxu1 %v352_v33  ;;  %436 = vmatpush.msra.mxu3 %v2884_v53 }
  0x6a   :  { %422 = vmatpush.msra.mxu2 %v353_v34  ;;  %456 = vmatpush.msrb.mxu0 %v2890_v54 }
  0x6b   :  { %403 = vmatpush.msra.mxu1 %v350_v35  ;;  %437 = vmatpush.msra.mxu3 %v2892_v55 }
  0x6c   :  { %423 = vmatpush.msra.mxu2 %v351_v36  ;;  %457 = vmatpush.msrb.mxu0 %v2898_v56 }
  0x6d   :  { %470 = vmatpush.msrb.mxu1 %v2826_v37  ;;  %438 = vmatpush.msra.mxu3 %v2900_v57 }
  0x6e   :  { %490 = vmatpush.msrb.mxu2 %v2832_v39  ;;  %458 = vmatpush.msrb.mxu0 %v2906_v58 }
  0x6f   :  { %471 = vmatpush.msrb.mxu1 %v2828_v38  ;;  %439 = vmatpush.msra.mxu3 %v2908_v59 }
  0x70   :  { %491 = vmatpush.msrb.mxu2 %v2837_v41  ;;  %459 = vmatpush.msrb.mxu0 %v2928_v2 }
  0x71   :  { %472 = vmatpush.msrb.mxu1 %v2834_v40  ;;  %440 = vmatpush.msra.mxu3 %v2914_v60 }
  0x72   :  { %492 = vmatpush.msrb.mxu2 %v2842_v42  ;;  %460 = vmatpush.msrb.mxu0 %v2934_v4 }
  0x73   :  { %473 = vmatpush.msrb.mxu1 %v2844_v43  ;;  %441 = vmatpush.msra.mxu3 %v2920_v61 }
  0x74   :  { %493 = vmatpush.msrb.mxu2 %v2850_v44  ;;  %461 = vmatpush.msrb.mxu0 %v2940_v5 }
  0x75   :  { %474 = vmatpush.msrb.mxu1 %v2852_v45  ;;  %442 = vmatpush.msra.mxu3 %v2926_v1 }
  0x76   :  { %494 = vmatpush.msrb.mxu2 %v2858_v46  ;;  %462 = vmatpush.msrb.mxu0 %v2946_v6 }
  0x77   :  { %475 = vmatpush.msrb.mxu1 %v2860_v47  ;;  %443 = vmatpush.msra.mxu3 %v2932_v3 }
  0x78   :  { %495 = vmatpush.msrb.mxu2 %v2866_v48  ;;  %463 = vmatpush.msrb.mxu0 %v2951_v7 }
  0x79   :  { %476 = vmatpush.msrb.mxu1 %v2868_v49  ;;  %544 = vmatpush.msrb.mxu3 %v2996_v17 }
  0x7a   :  { %496 = vmatpush.msrb.mxu2 %v2874_v50  ;;  %564 = vmatpush.msra.mxu0 %v2998_v18 }
  0x7b   :  { %477 = vmatpush.msrb.mxu1 %v2876_v51 }
  0x7c   :  { %497 = vmatpush.msrb.mxu2 %v2882_v52 }
  0x7d   :  { %478 = vmatpush.msrb.mxu1 %v2884_v53 }
  0x7e   :  { %498 = vmatpush.msrb.mxu2 %v2890_v54 }
  0x7f   :  { %479 = vmatpush.msrb.mxu1 %v2892_v55 }
  0x80   :  { %499 = vmatpush.msrb.mxu2 %v2898_v56 }
  0x81   :  { %480 = vmatpush.msrb.mxu1 %v2900_v57 }
  0x82   :  { %500 = vmatpush.msrb.mxu2 %v2906_v58 }
  0x83   :  { %481 = vmatpush.msrb.mxu1 %v2908_v59 }
  0x84   :  { %501 = vmatpush.msrb.mxu2 %v2928_v2 }
  0x85   :  { %482 = vmatpush.msrb.mxu1 %v2914_v60 }
  0x86   :  { %502 = vmatpush.msrb.mxu2 %v2934_v4 }
  0x87   :  { %483 = vmatpush.msrb.mxu1 %v2920_v61 }
  0x88   :  { %503 = vmatpush.msrb.mxu2 %v2940_v5 }
  0x89   :  { %484 = vmatpush.msrb.mxu1 %v2926_v1 }
  0x8a   :  { %504 = vmatpush.msrb.mxu2 %v2946_v6 }
  0x8b   :  { %485 = vmatpush.msrb.mxu1 %v2932_v3 }
  0x8c   :  { %505 = vmatpush.msrb.mxu2 %v2951_v7 }
  0xd0   :  { %v313_v63 = vpop.f32.mrf.mxu0 }
  0xd1   :  { %v314_v0 = vadd.f32 %v2246_v62, %v313_v63  ;;  %v904_v63 = vld [vmem:[#allocation13 + $0x1e8] sm:$0xff] }
  0xd3   :  { %404 = vmatmul.f32.vlgmr.msra.gmra.mxu1 %v314_v0  ;;  %424 = vmatmul.f32.vlgmr.msra.gmra.mxu2 %v314_v0 }
  0xd4   :  { %664 = vmatpush.msra.mxu1 %v2826_v37  ;;  %684 = vmatpush.msra.mxu2 %v2832_v39 }
  0xd6   :  { %665 = vmatpush.msra.mxu1 %v2828_v38  ;;  %685 = vmatpush.msra.mxu2 %v2837_v41 }
  0xd8   :  { %666 = vmatpush.msra.mxu1 %v2834_v40  ;;  %686 = vmatpush.msra.mxu2 %v2842_v42 }
  0xda   :  { %667 = vmatpush.msra.mxu1 %v2844_v43  ;;  %687 = vmatpush.msra.mxu2 %v2850_v44 }
  0xdc   :  { %668 = vmatpush.msra.mxu1 %v2852_v45  ;;  %688 = vmatpush.msra.mxu2 %v2858_v46 }
  0xde   :  { %669 = vmatpush.msra.mxu1 %v2860_v47  ;;  %689 = vmatpush.msra.mxu2 %v2866_v48 }
  0xe0   :  { %670 = vmatpush.msra.mxu1 %v2868_v49  ;;  %690 = vmatpush.msra.mxu2 %v2874_v50 }
  0xe2   :  { %671 = vmatpush.msra.mxu1 %v2876_v51  ;;  %691 = vmatpush.msra.mxu2 %v2882_v52 }
  0xe4   :  { %672 = vmatpush.msra.mxu1 %v2884_v53  ;;  %692 = vmatpush.msra.mxu2 %v2890_v54 }
  0xe6   :  { %673 = vmatpush.msra.mxu1 %v2892_v55  ;;  %693 = vmatpush.msra.mxu2 %v2898_v56 }
  0xe8   :  { %674 = vmatpush.msra.mxu1 %v2900_v57  ;;  %694 = vmatpush.msra.mxu2 %v2906_v58 }
  0xea   :  { %675 = vmatpush.msra.mxu1 %v2908_v59  ;;  %695 = vmatpush.msra.mxu2 %v2928_v2 }
  0xec   :  { %676 = vmatpush.msra.mxu1 %v2914_v60  ;;  %696 = vmatpush.msra.mxu2 %v2934_v4 }
  0xee   :  { %677 = vmatpush.msra.mxu1 %v2920_v61  ;;  %697 = vmatpush.msra.mxu2 %v2940_v5 }
  0xf0   :  { %678 = vmatpush.msra.mxu1 %v2926_v1  ;;  %698 = vmatpush.msra.mxu2 %v2946_v6 }
  0xf2   :  { %679 = vmatpush.msra.mxu1 %v2932_v3  ;;  %699 = vmatpush.msra.mxu2 %v2951_v7 }
 0x150   :  { %v405_v10 = vpop.f32.mrf.mxu1 }
 0x151   :  { %v2981_v11 = vadd.f32 %v405_v10, %v384_v9  ;;  %v901_v9 = vld [vmem:[#allocation13 + $0x1d0] sm:$0xff]  ;;  %v902_v10 = vld [vmem:[#allocation13 + $0x1d8] sm:$0xff] }
 0x153   :  { %444 = vmatmul.f32.vlgmr.msra.gmra.mxu3 %v2981_v11  ;;  %v468_v12 = vmul.f32 %v2981_v11, %v2981_v11 }
 0x154   :  { %587 = vmatpush.msra.mxu3 %v2996_v17 }
 0x155   :  { %486 = vmatmul.f32.vlgmr.msrb.gmra.mxu1 %v468_v12  ;;  %v899_v12 = vld [vmem:[#allocation13 + $0x1c0] sm:$0xff] }
 0x156   :  { %v425_v14 = vpop.f32.mrf.mxu2 }
 0x157   :  { %v2990_v15 = vadd.f32 %v425_v14, %v385_v13  ;;  %v874_v13 = vld [vmem:[#allocation13 + $0xf8] sm:$0xff]  ;;  %v900_v14 = vld [vmem:[#allocation13 + $0x1c8] sm:$0xff] }
 0x159   :  { %464 = vmatmul.f32.vlgmr.msrb.gmra.mxu0 %v2990_v15  ;;  %v469_v16 = vmul.f32 %v2990_v15, %v2990_v15 }
 0x15a   :  { %607 = vmatpush.msrb.mxu0 %v2998_v18 }
 0x15b   :  { %506 = vmatmul.f32.vlgmr.msrb.gmra.mxu2 %v469_v16  ;;  %v897_v16 = vld [vmem:[#allocation13 + $0x1b0] sm:$0xff] }
 0x1d2   :  { %v487_v23 = vpop.f32.mrf.mxu1 }
 0x1d6   :  { %v445_v19 = vpop.f32.mrf.mxu3  ;;  %v465_v20 = vpop.f32.mrf.mxu0 }
 0x1d7   :  { %v466_v21 = vadd.f32 %v465_v20, %v445_v19  ;;  %v869_v19 = vld [vmem:[#allocation13 + $0xd0] sm:$0xff]  ;;  %v895_v20 = vld [vmem:[#allocation13 + $0x1a0] sm:$0xff] }
 0x1d9   :  { %v510_v22 = vmul.f32 0.05263158, %v466_v21  ;;  %v870_v21 = vld [vmem:[#allocation13 + $0xd8] sm:$0xff] }
 0x1db   :  { %2191 = vmatmul.msk.f32.vlgmr.msrb.gmra.mxu3 %vm525_vm1, %v510_v22  ;;  %2192 = vmatmul.msk.f32.vlgmr.msra.gmra.mxu0 %vm525_vm1, %v510_v22  ;;  %v512_v27 = vmul.f32 %v510_v22, %v510_v22  ;;  %v896_v22 = vld [vmem:[#allocation13 + $0x1a8] sm:$0xff] }
 0x1dc   :  { %642 = vmatpush.msra.mxu0 %v2832_v39  ;;  %622 = vmatpush.msrb.mxu3 %v2826_v37 }
 0x1de   :  { %v507_v24 = vpop.f32.mrf.mxu2  ;;  %643 = vmatpush.msra.mxu0 %v2837_v41  ;;  %623 = vmatpush.msrb.mxu3 %v2828_v38 }
 0x1df   :  { %v508_v25 = vadd.f32 %v507_v24, %v487_v23  ;;  %v867_v23 = vld [vmem:[#allocation13 + $0xc0] sm:$0xff]  ;;  %v893_v24 = vld [vmem:[#allocation13 + $0x190] sm:$0xff] }
 0x1e0   :  { %644 = vmatpush.msra.mxu0 %v2842_v42  ;;  %624 = vmatpush.msrb.mxu3 %v2834_v40 }
 0x1e1   :  { %v511_v26 = vmul.f32 0.05263158, %v508_v25  ;;  %v868_v25 = vld [vmem:[#allocation13 + $0xc8] sm:$0xff] }
 0x1e2   :  { %645 = vmatpush.msra.mxu0 %v2850_v44  ;;  %625 = vmatpush.msrb.mxu3 %v2844_v43 }
 0x1e3   :  { %v513_v28 = vsub.f32 %v511_v26, %v512_v27  ;;  %v894_v26 = vld [vmem:[#allocation13 + $0x198] sm:$0xff]  ;;  %v865_v27 = vld [vmem:[#allocation13 + $0xb0] sm:$0xff] }
 0x1e4   :  { %646 = vmatpush.msra.mxu0 %v2858_v46  ;;  %626 = vmatpush.msrb.mxu3 %v2852_v45 }
 0x1e5   :  { %v514_v29 = vadd.f32 1e-05, %v513_v28  ;;  %v891_v28 = vld [vmem:[#allocation13 + $0x180] sm:$0xff] }
 0x1e6   :  { %647 = vmatpush.msra.mxu0 %v2866_v48  ;;  %627 = vmatpush.msrb.mxu3 %v2860_v47 }
 0x1e7   :  { %2247 = vrsqrt.f32 %v514_v29  ;;  %vm521_vm3 = vweird.f32 %v514_v29 }
 0x1e8   :  { %648 = vmatpush.msra.mxu0 %v2874_v50  ;;  %628 = vmatpush.msrb.mxu3 %v2868_v49 }
 0x1ea   :  { %649 = vmatpush.msra.mxu0 %v2882_v52  ;;  %629 = vmatpush.msrb.mxu3 %v2876_v51  ;;  %v905_v51 = vld [vmem:[#allocation13 + $0x1f0] sm:$0xff]  ;;  %v903_v52 = vld [vmem:[#allocation13 + $0x1e0] sm:$0xff] }
 0x1eb   :  { %933 = vmatpush.msrb.mxu2 %v905_v51  ;;  %v856_v51 = vld [vmem:[#allocation13 + $0x68] sm:$0xff] }
 0x1ec   :  { %650 = vmatpush.msra.mxu0 %v2890_v54  ;;  %630 = vmatpush.msrb.mxu3 %v2884_v53 }
 0x1ed   :  { %v2248_v30 = vpop.eup %2247  ;;  %934 = vmatpush.msrb.mxu2 %v903_v52  ;;  %v882_v52 = vld [vmem:[#allocation13 + $0x138] sm:$0xff] }
 0x1ee   :  { %v516_v31 = vmul.f32 %v2248_v30, %v514_v29  ;;  %651 = vmatpush.msra.mxu0 %v2898_v56  ;;  %631 = vmatpush.msrb.mxu3 %v2892_v55  ;;  %vm522_vm2 = vweird.f32 %v2248_v30  ;;  %v866_v29 = vld [vmem:[#allocation13 + $0xb8] sm:$0xff] }
 0x1ef   :  { %vm523_vm4 = vmor %vm521_vm3, %vm522_vm2  ;;  %935 = vmatpush.msrb.mxu2 %v901_v9  ;;  %v840_v9 = vld [vmem:[#allocation16 + $0xf8] sm:$0xff] }
 0x1f0   :  { %v517_v32 = vmul.f32 %v2248_v30, %v516_v31  ;;  %652 = vmatpush.msra.mxu0 %v2906_v58  ;;  %632 = vmatpush.msrb.mxu3 %v2900_v57  ;;  %v863_v31 = vld [vmem:[#allocation13 + $0xa0] sm:$0xff] }
 0x1f1   :  { %936 = vmatpush.msrb.mxu2 %v899_v12  ;;  %v838_v12 = vld [vmem:[#allocation16 + $0xe8] sm:$0xff] }
 0x1f2   :  { %v518_v33 = vmul.f32 0.5, %v517_v32  ;;  %653 = vmatpush.msra.mxu0 %v2928_v2  ;;  %633 = vmatpush.msrb.mxu3 %v2908_v59  ;;  %v889_v32 = vld [vmem:[#allocation13 + $0x170] sm:$0xff] }
 0x1f3   :  { %937 = vmatpush.msrb.mxu2 %v897_v16  ;;  %v836_v16 = vld [vmem:[#allocation16 + $0xd8] sm:$0xff] }
 0x1f4   :  { %v519_v34 = vsub.f32 1.5, %v518_v33  ;;  %654 = vmatpush.msra.mxu0 %v2934_v4  ;;  %634 = vmatpush.msrb.mxu3 %v2914_v60  ;;  %v906_v60 = vld [vmem:[#allocation13 + $0x1f8] sm:$0xff]  ;;  %v864_v33 = vld [vmem:[#allocation13 + $0xa8] sm:$0xff] }
 0x1f5   :  { %938 = vmatpush.msrb.mxu2 %v895_v20  ;;  %v834_v20 = vld [vmem:[#allocation16 + $0xc8] sm:$0xff] }
 0x1f6   :  { %v520_v35 = vmul.f32 %v2248_v30, %v519_v34  ;;  %655 = vmatpush.msra.mxu0 %v2940_v5  ;;  %635 = vmatpush.msrb.mxu3 %v2920_v61  ;;  %v890_v34 = vld [vmem:[#allocation13 + $0x178] sm:$0xff] }
 0x1f7   :  { %939 = vmatpush.msrb.mxu2 %v893_v24  ;;  %v815_v24 = vld [vmem:[#allocation16 + $0x30] sm:$0xff] }
 0x1f8   :  { %v524_v36 = vsel %vm523_vm4, %v2248_v30, %v520_v35  ;;  %656 = vmatpush.msra.mxu0 %v2946_v6  ;;  %636 = vmatpush.msrb.mxu3 %v2926_v1  ;;  %v892_v30 = vld [vmem:[#allocation13 + $0x188] sm:$0xff]  ;;  %v861_v35 = vld [vmem:[#allocation13 + $0x90] sm:$0xff] }
 0x1f9   :  { %2193 = vmatmul.msk.f32.vlgmr.msra.gmra.mxu3 %vm525_vm1, %v524_v36  ;;  %2194 = vmatmul.msk.f32.vlgmr.msrb.gmra.mxu0 %vm525_vm1, %v524_v36  ;;  %v887_v36 = vld [vmem:[#allocation13 + $0x160] sm:$0xff] }
 0x1fa   :  { %657 = vmatpush.msra.mxu0 %v2951_v7  ;;  %637 = vmatpush.msrb.mxu3 %v2932_v3 }
 0x1fb   :  { %940 = vmatpush.msrb.mxu2 %v891_v28 }
 0x1fc   :  { %737 = vmatpush.msra.mxu3 %v2996_v17  ;;  %757 = vmatpush.msrb.mxu0 %v2998_v18 }
 0x1fd   :  { %941 = vmatpush.msrb.mxu2 %v889_v32  ;;  %v814_v32 = vld [vmem:[#allocation16 + $0x28] sm:$0xff] }
 0x1ff   :  { %942 = vmatpush.msrb.mxu2 %v887_v36  ;;  %v812_v36 = vld [vmem:[#allocation16 + $0x18] sm:$0xff] }
 0x258   :  { %v566_v37 = vpop.f32.mrf.mxu0 }
 0x259   :  { %v613_v39 = vsub.f32 %v2990_v15, %v566_v37  ;;  %v871_v15 = vld [vmem:[#allocation13 + $0xe0] sm:$0xff]  ;;  %v862_v37 = vld [vmem:[#allocation13 + $0x98] sm:$0xff] }
 0x25e   :  { %v546_v38 = vpop.f32.mrf.mxu3 }
 0x25f   :  { %v612_v43 = vsub.f32 %v2981_v11, %v546_v38  ;;  %v873_v11 = vld [vmem:[#allocation13 + $0xf0] sm:$0xff]  ;;  %v888_v38 = vld [vmem:[#allocation13 + $0x168] sm:$0xff] }
 0x260   :  { %913 = vmatpush.msrb.mxu1 %v873_v11  ;;  %v839_v11 = vld [vmem:[#allocation16 + $0xf0] sm:$0xff] }
 0x262   :  { %914 = vmatpush.msrb.mxu1 %v871_v15  ;;  %v820_v15 = vld [vmem:[#allocation16 + $0x58] sm:$0xff] }
 0x264   :  { %915 = vmatpush.msrb.mxu1 %v869_v19  ;;  %v818_v19 = vld [vmem:[#allocation16 + $0x48] sm:$0xff] }
 0x266   :  { %916 = vmatpush.msrb.mxu1 %v867_v23 }
 0x268   :  { %917 = vmatpush.msrb.mxu1 %v865_v27 }
 0x26a   :  { %918 = vmatpush.msrb.mxu1 %v863_v31 }
 0x26c   :  { %919 = vmatpush.msrb.mxu1 %v861_v35  ;;  %v832_v35 = vld [vmem:[#allocation16 + $0xb8] sm:$0xff] }
 0x276   :  { %v609_v40 = vpop.f32.mrf.mxu0 }
 0x277   :  { %v615_v41 = vmul.f32 %v613_v39, %v609_v40  ;;  %v859_v39 = vld [vmem:[#allocation13 + $0x80] sm:$0xff]  ;;  %v885_v40 = vld [vmem:[#allocation13 + $0x150] sm:$0xff] }
 0x278   :  { %920 = vmatpush.msrb.mxu1 %v859_v39  ;;  %943 = vmatpush.msrb.mxu2 %v885_v40  ;;  %v829_v39 = vld [vmem:[#allocation16 + $0xa0] sm:$0xff] }
 0x279   :  { %vm617_vm5 = vcmp.ge.f32.partialorder %v615_v41, 0.0  ;;  %v619_v42 = vmul.f32 0.01, %v615_v41  ;;  %v809_v40 = vld [vmem:[#allocation16] sm:$0xff] }
 0x27b   :  { %v3044_v44 = vsel %vm617_vm5, %v615_v41, %v619_v42  ;;  %v860_v41 = vld [vmem:[#allocation13 + $0x88] sm:$0xff]  ;;  %v886_v42 = vld [vmem:[#allocation13 + $0x158] sm:$0xff] }
 0x27c   :  { %v589_v45 = vpop.f32.mrf.mxu3  ;;  %658 = vmatmul.f32.vlgmr.msra.gmra.mxu0 %v3044_v44  ;;  %v663_v46 = vmul.f32 %v3044_v44, %v3044_v44 }
 0x27d   :  { %v614_v47 = vmul.f32 %v612_v43, %v589_v45  ;;  %800 = vmatpush.msra.mxu0 %v2998_v18  ;;  %v898_v18 = vld [vmem:[#allocation13 + $0x1b8] sm:$0xff]  ;;  %v857_v43 = vld [vmem:[#allocation13 + $0x70] sm:$0xff]  ;;  %v883_v45 = vld [vmem:[#allocation13 + $0x140] sm:$0xff] }
 0x27e   :  { %700 = vmatmul.f32.vlgmr.msra.gmra.mxu2 %v663_v46  ;;  %v858_v46 = vld [vmem:[#allocation13 + $0x78] sm:$0xff]  ;;  %921 = vmatpush.msrb.mxu1 %v857_v43  ;;  %v826_v43 = vld [vmem:[#allocation16 + $0x88] sm:$0xff] }
 0x27f   :  { %vm616_vm6 = vcmp.ge.f32.partialorder %v614_v47, 0.0  ;;  %v618_v48 = vmul.f32 0.01, %v614_v47  ;;  %944 = vmatpush.msrb.mxu2 %v883_v45  ;;  %v825_v45 = vld [vmem:[#allocation16 + $0x80] sm:$0xff] }
 0x281   :  { %v3050_v49 = vsel %vm616_vm6, %v614_v47, %v618_v48  ;;  %v884_v47 = vld [vmem:[#allocation13 + $0x148] sm:$0xff]  ;;  %v855_v48 = vld [vmem:[#allocation13 + $0x60] sm:$0xff] }
 0x282   :  { %638 = vmatmul.f32.vlgmr.msrb.gmra.mxu3 %v3050_v49  ;;  %v662_v50 = vmul.f32 %v3050_v49, %v3050_v49  ;;  %922 = vmatpush.msrb.mxu1 %v855_v48 }
 0x283   :  { %780 = vmatpush.msrb.mxu3 %v2996_v17  ;;  %v872_v17 = vld [vmem:[#allocation13 + $0xe8] sm:$0xff] }
 0x284   :  { %680 = vmatmul.f32.vlgmr.msra.gmra.mxu1 %v662_v50  ;;  %v881_v50 = vld [vmem:[#allocation13 + $0x130] sm:$0xff] }
 0x285   :  { %945 = vmatpush.msrb.mxu2 %v881_v50 }
 0x2f9   :  { %v659_v55 = vpop.f32.mrf.mxu0 }
 0x301   :  { %v681_v53 = vpop.f32.mrf.mxu1  ;;  %v701_v54 = vpop.f32.mrf.mxu2 }
 0x302   :  { %v702_v57 = vadd.f32 %v701_v54, %v681_v53  ;;  %v853_v53 = vld [vmem:[#allocation13 + $0x50] sm:$0xff]  ;;  %v879_v54 = vld [vmem:[#allocation13 + $0x120] sm:$0xff] }
 0x303   :  { %923 = vmatpush.msrb.mxu1 %v853_v53  ;;  %946 = vmatpush.msrb.mxu2 %v879_v54 }
 0x304   :  { %v705_v61 = vmul.f32 0.05263158, %v702_v57  ;;  %v851_v57 = vld [vmem:[#allocation13 + $0x40] sm:$0xff] }
 0x305   :  { %v639_v56 = vpop.f32.mrf.mxu3  ;;  %924 = vmatpush.msrb.mxu1 %v851_v57 }
 0x306   :  { %v660_v58 = vadd.f32 %v659_v55, %v639_v56  ;;  %v854_v55 = vld [vmem:[#allocation13 + $0x58] sm:$0xff]  ;;  %v880_v56 = vld [vmem:[#allocation13 + $0x128] sm:$0xff] }
 0x308   :  { %v704_v59 = vmul.f32 0.05263158, %v660_v58  ;;  %v877_v58 = vld [vmem:[#allocation13 + $0x110] sm:$0xff] }
 0x309   :  { %947 = vmatpush.msrb.mxu2 %v877_v58 }
 0x30a   :  { %v706_v62 = vmul.f32 %v704_v59, %v704_v59  ;;  %2195 = vmatmul.msk.f32.vlgmr.msra.gmra.mxu3 %vm525_vm1, %v704_v59  ;;  %2196 = vmatmul.msk.f32.vlgmr.msrb.gmra.mxu0 %vm525_vm1, %v704_v59  ;;  %v852_v59 = vld [vmem:[#allocation13 + $0x48] sm:$0xff] }
 0x30b   :  { %973 = vmatpush.msrb.mxu0 %v906_v60  ;;  %953 = vmatpush.msra.mxu3 %v874_v13  ;;  %v878_v60 = vld [vmem:[#allocation13 + $0x118] sm:$0xff]  ;;  %v821_v13 = vld [vmem:[#allocation16 + $0x60] sm:$0xff] }
 0x30c   :  { %v707_v0 = vsub.f32 %v705_v61, %v706_v62  ;;  %v849_v61 = vld [vmem:[#allocation13 + $0x30] sm:$0xff]  ;;  %v875_v62 = vld [vmem:[#allocation13 + $0x100] sm:$0xff] }
 0x30d   :  { %974 = vmatpush.msrb.mxu0 %v904_v63  ;;  %954 = vmatpush.msra.mxu3 %v872_v17  ;;  %v850_v63 = vld [vmem:[#allocation13 + $0x38] sm:$0xff] }
 0x30e   :  { %v708_v1 = vadd.f32 1e-05, %v707_v0  ;;  %925 = vmatpush.msrb.mxu1 %v849_v61  ;;  %948 = vmatpush.msrb.mxu2 %v875_v62  ;;  %v876_v0 = vld [vmem:[#allocation13 + $0x108] sm:$0xff]  ;;  %v819_v17 = vld [vmem:[#allocation16 + $0x50] sm:$0xff] }
 0x30f   :  { %975 = vmatpush.msrb.mxu0 %v902_v10  ;;  %955 = vmatpush.msra.mxu3 %v870_v21  ;;  %v822_v10 = vld [vmem:[#allocation16 + $0x68] sm:$0xff]  ;;  %v817_v21 = vld [vmem:[#allocation16 + $0x40] sm:$0xff] }
 0x310   :  { %2249 = vrsqrt.f32 %v708_v1  ;;  %vm715_vm8 = vweird.f32 %v708_v1  ;;  %1013 = vmatpush.msra.mxu2 %v840_v9  ;;  %v842_v61 = vld [vmem:[#allocation18 + $0x8] sm:$0xff]  ;;  %v1281_v62 = vld [vmem:[#allocation19 + $0x1f0] sm:$0xff] }
 0x311   :  { %976 = vmatpush.msrb.mxu0 %v900_v14  ;;  %956 = vmatpush.msra.mxu3 %v868_v25  ;;  %v837_v14 = vld [vmem:[#allocation16 + $0xe0] sm:$0xff] }
 0x312   :  { %1014 = vmatpush.msra.mxu2 %v839_v11 }
 0x313   :  { %977 = vmatpush.msrb.mxu0 %v898_v18  ;;  %957 = vmatpush.msra.mxu3 %v866_v29  ;;  %v835_v18 = vld [vmem:[#allocation16 + $0xd0] sm:$0xff] }
 0x314   :  { %1015 = vmatpush.msra.mxu2 %v838_v12 }
 0x315   :  { %978 = vmatpush.msrb.mxu0 %v896_v22  ;;  %958 = vmatpush.msra.mxu3 %v864_v33  ;;  %v816_v22 = vld [vmem:[#allocation16 + $0x38] sm:$0xff]  ;;  %v833_v33 = vld [vmem:[#allocation16 + $0xc0] sm:$0xff] }
 0x316   :  { %v2250_v2 = vpop.eup %2249  ;;  %1016 = vmatpush.msra.mxu2 %v837_v14 }
 0x317   :  { %v710_v3 = vmul.f32 %v2250_v2, %v708_v1  ;;  %vm716_vm7 = vweird.f32 %v2250_v2  ;;  %979 = vmatpush.msrb.mxu0 %v894_v26  ;;  %959 = vmatpush.msra.mxu3 %v862_v37  ;;  %v847_v1 = vld [vmem:[#allocation13 + $0x20] sm:$0xff]  ;;  %v830_v37 = vld [vmem:[#allocation16 + $0xa8] sm:$0xff] }
 0x318   :  { %vm717_vm9 = vmor %vm715_vm8, %vm716_vm7  ;;  %926 = vmatpush.msrb.mxu1 %v847_v1  ;;  %1017 = vmatpush.msra.mxu2 %v836_v16 }
 0x319   :  { %v711_v4 = vmul.f32 %v2250_v2, %v710_v3  ;;  %980 = vmatpush.msrb.mxu0 %v892_v30  ;;  %960 = vmatpush.msra.mxu3 %v860_v41  ;;  %v845_v3 = vld [vmem:[#allocation13 + $0x10] sm:$0xff]  ;;  %v828_v41 = vld [vmem:[#allocation16 + $0x98] sm:$0xff] }
 0x31a   :  { %927 = vmatpush.msrb.mxu1 %v845_v3  ;;  %1018 = vmatpush.msra.mxu2 %v835_v18 }
 0x31b   :  { %v712_v5 = vmul.f32 0.5, %v711_v4  ;;  %981 = vmatpush.msrb.mxu0 %v890_v34  ;;  %961 = vmatpush.msra.mxu3 %v858_v46  ;;  %v846_v4 = vld [vmem:[#allocation13 + $0x18] sm:$0xff]  ;;  %v813_v34 = vld [vmem:[#allocation16 + $0x20] sm:$0xff]  ;;  %v907_v46 = vld [vmem:[#allocation15] sm:$0x3] }
 0x31c   :  { %1019 = vmatpush.msra.mxu2 %v834_v20  ;;  %v910_v53 = vperm.slane %v907_v46, 1 }
 0x31d   :  { %v713_v6 = vsub.f32 1.5, %v712_v5  ;;  %982 = vmatpush.msrb.mxu0 %v888_v38  ;;  %962 = vmatpush.msra.mxu3 %v856_v51  ;;  %v843_v5 = vld [vmem:[#allocation13] sm:$0xff]  ;;  %v810_v38 = vld [vmem:[#allocation16 + $0x8] sm:$0xff] }
 0x31e   :  { %928 = vmatpush.msrb.mxu1 %v843_v5  ;;  %1020 = vmatpush.msra.mxu2 %v833_v33 }
 0x31f   :  { %v714_v7 = vmul.f32 %v2250_v2, %v713_v6  ;;  %983 = vmatpush.msrb.mxu0 %v886_v42  ;;  %963 = vmatpush.msra.mxu3 %v854_v55  ;;  %v844_v6 = vld [vmem:[#allocation13 + $0x8] sm:$0xff]  ;;  %v827_v42 = vld [vmem:[#allocation16 + $0x90] sm:$0xff] }
 0x320   :  { %1021 = vmatpush.msra.mxu2 %v832_v35 }
 0x321   :  { %v718_v8 = vsel %vm717_vm9, %v2250_v2, %v714_v7  ;;  %984 = vmatpush.msrb.mxu0 %v884_v47  ;;  %964 = vmatpush.msra.mxu3 %v852_v59  ;;  %v848_v2 = vld [vmem:[#allocation13 + $0x28] sm:$0xff]  ;;  %v824_v7 = vld [vmem:[#allocation16 + $0x78] sm:$0xff]  ;;  %v909_v47 = vperm.slane %v907_v46, 0  ;;  %v1263_v46 = vld [vmem:[#allocation19 + $0x160] sm:$0xff] }
 0x322   :  { %2197 = vmatmul.msk.f32.vlgmr.msrb.gmra.mxu3 %vm525_vm1, %v718_v8  ;;  %2198 = vmatmul.msk.f32.vlgmr.msra.gmra.mxu0 %vm525_vm1, %v718_v8  ;;  %v823_v8 = vld [vmem:[#allocation16 + $0x70] sm:$0xff] }
 0x323   :  { %985 = vmatpush.msrb.mxu0 %v882_v52  ;;  %965 = vmatpush.msra.mxu3 %v850_v63  ;;  %v1282_v63 = vld [vmem:[#allocation19 + $0x1f8] sm:$0xff] }
 0x324   :  { %993 = vmatpush.msra.mxu1 %v824_v7 }
 0x325   :  { %986 = vmatpush.msrb.mxu0 %v880_v56  ;;  %966 = vmatpush.msra.mxu3 %v848_v2 }
 0x326   :  { %994 = vmatpush.msra.mxu1 %v823_v8 }
 0x327   :  { %987 = vmatpush.msrb.mxu0 %v878_v60  ;;  %967 = vmatpush.msra.mxu3 %v846_v4  ;;  %v841_v60 = vld [vmem:[#allocation18] sm:$0xff] }
 0x328   :  { %995 = vmatpush.msra.mxu1 %v822_v10 }
 0x329   :  { %988 = vmatpush.msrb.mxu0 %v876_v0  ;;  %968 = vmatpush.msra.mxu3 %v844_v6 }
 0x32a   :  { %996 = vmatpush.msra.mxu1 %v821_v13 }
 0x32b   :  { %1035 = vmatpush.msrb.mxu3 %v824_v7  ;;  %1055 = vmatpush.msra.mxu0 %v840_v9 }
 0x32c   :  { %997 = vmatpush.msra.mxu1 %v820_v15 }
 0x32d   :  { %1036 = vmatpush.msrb.mxu3 %v823_v8  ;;  %1056 = vmatpush.msra.mxu0 %v839_v11 }
 0x32e   :  { %998 = vmatpush.msra.mxu1 %v819_v17 }
 0x32f   :  { %1037 = vmatpush.msrb.mxu3 %v822_v10  ;;  %1057 = vmatpush.msra.mxu0 %v838_v12 }
 0x330   :  { %999 = vmatpush.msra.mxu1 %v818_v19 }
 0x331   :  { %1038 = vmatpush.msrb.mxu3 %v821_v13  ;;  %1058 = vmatpush.msra.mxu0 %v837_v14 }
 0x332   :  { %1000 = vmatpush.msra.mxu1 %v817_v21 }
 0x333   :  { %1039 = vmatpush.msrb.mxu3 %v820_v15  ;;  %1059 = vmatpush.msra.mxu0 %v836_v16 }
 0x334   :  { %1001 = vmatpush.msra.mxu1 %v816_v22 }
 0x335   :  { %1040 = vmatpush.msrb.mxu3 %v819_v17  ;;  %1060 = vmatpush.msra.mxu0 %v835_v18  ;;  %v1279_v18 = vld [vmem:[#allocation19 + $0x1e0] sm:$0xff] }
 0x336   :  { %1002 = vmatpush.msra.mxu1 %v815_v24 }
 0x337   :  { %1041 = vmatpush.msrb.mxu3 %v818_v19  ;;  %1061 = vmatpush.msra.mxu0 %v834_v20  ;;  %v1280_v19 = vld [vmem:[#allocation19 + $0x1e8] sm:$0xff]  ;;  %v1277_v20 = vld [vmem:[#allocation19 + $0x1d0] sm:$0xff] }
 0x338   :  { %1003 = vmatpush.msra.mxu1 %v814_v32 }
 0x339   :  { %1042 = vmatpush.msrb.mxu3 %v817_v21  ;;  %1062 = vmatpush.msra.mxu0 %v833_v33  ;;  %v1278_v21 = vld [vmem:[#allocation19 + $0x1d8] sm:$0xff]  ;;  %v1272_v33 = vld [vmem:[#allocation19 + $0x1a8] sm:$0xff] }
 0x33a   :  { %1004 = vmatpush.msra.mxu1 %v813_v34 }
 0x33b   :  { %1043 = vmatpush.msrb.mxu3 %v816_v22  ;;  %1063 = vmatpush.msra.mxu0 %v832_v35  ;;  %v1249_v22 = vld [vmem:[#allocation19 + $0xf0] sm:$0xff] }
 0x33c   :  { %1005 = vmatpush.msra.mxu1 %v812_v36  ;;  %v1269_v35 = vld [vmem:[#allocation19 + $0x190] sm:$0xff] }
 0x33d   :  { %1044 = vmatpush.msrb.mxu3 %v815_v24  ;;  %v1250_v24 = vld [vmem:[#allocation19 + $0xf8] sm:$0xff] }
 0x33f   :  { %1045 = vmatpush.msrb.mxu3 %v814_v32  ;;  %v1246_v32 = vld [vmem:[#allocation19 + $0xd8] sm:$0xff] }
 0x341   :  { %1046 = vmatpush.msrb.mxu3 %v813_v34  ;;  %v1243_v34 = vld [vmem:[#allocation19 + $0xc0] sm:$0xff] }
 0x343   :  { %1047 = vmatpush.msrb.mxu3 %v812_v36  ;;  %v1244_v36 = vld [vmem:[#allocation19 + $0xc8] sm:$0xff] }
 0x387   :  { %v759_v23 = vpop.f32.mrf.mxu0 }
 0x388   :  { %v806_v26 = vsub.f32 %v3044_v44, %v759_v23  ;;  %v831_v44 = vld [vmem:[#allocation16 + $0xb0] sm:$0xff] }
 0x389   :  { %1022 = vmatpush.msra.mxu2 %v831_v44  ;;  %1064 = vmatpush.msra.mxu0 %v831_v44  ;;  %v1275_v23 = vld [vmem:[#allocation19 + $0x1c0] sm:$0xff]  ;;  %v1270_v44 = vld [vmem:[#allocation19 + $0x198] sm:$0xff] }
 0x38b   :  { %1023 = vmatpush.msra.mxu2 %v830_v37  ;;  %1065 = vmatpush.msra.mxu0 %v830_v37  ;;  %v1267_v37 = vld [vmem:[#allocation19 + $0x180] sm:$0xff] }
 0x38d   :  { %v739_v25 = vpop.f32.mrf.mxu3  ;;  %1024 = vmatpush.msra.mxu2 %v829_v39  ;;  %1066 = vmatpush.msra.mxu0 %v829_v39  ;;  %v1268_v39 = vld [vmem:[#allocation19 + $0x188] sm:$0xff] }
 0x38e   :  { %v805_v29 = vsub.f32 %v3050_v49, %v739_v25  ;;  %v811_v49 = vld [vmem:[#allocation16 + $0x10] sm:$0xff]  ;;  %v1276_v25 = vld [vmem:[#allocation19 + $0x1c8] sm:$0xff] }
 0x38f   :  { %1006 = vmatpush.msra.mxu1 %v811_v49  ;;  %1048 = vmatpush.msrb.mxu3 %v811_v49  ;;  %v1241_v49 = vld [vmem:[#allocation19 + $0xb0] sm:$0xff] }
 0x390   :  { %1025 = vmatpush.msra.mxu2 %v828_v41  ;;  %1067 = vmatpush.msra.mxu0 %v828_v41  ;;  %v1265_v41 = vld [vmem:[#allocation19 + $0x170] sm:$0xff] }
 0x391   :  { %1007 = vmatpush.msra.mxu1 %v810_v38  ;;  %1049 = vmatpush.msrb.mxu3 %v810_v38  ;;  %v1242_v38 = vld [vmem:[#allocation19 + $0xb8] sm:$0xff] }
 0x392   :  { %1026 = vmatpush.msra.mxu2 %v827_v42  ;;  %1068 = vmatpush.msra.mxu0 %v827_v42  ;;  %v1240_v42 = vld [vmem:[#allocation19 + $0xa8] sm:$0xff] }
 0x393   :  { %1008 = vmatpush.msra.mxu1 %v809_v40  ;;  %1050 = vmatpush.msrb.mxu3 %v809_v40  ;;  %v1239_v40 = vld [vmem:[#allocation19 + $0xa0] sm:$0xff] }
 0x394   :  { %1027 = vmatpush.msra.mxu2 %v826_v43  ;;  %1069 = vmatpush.msra.mxu0 %v826_v43  ;;  %v1266_v43 = vld [vmem:[#allocation19 + $0x178] sm:$0xff] }
 0x396   :  { %1028 = vmatpush.msra.mxu2 %v825_v45  ;;  %1070 = vmatpush.msra.mxu0 %v825_v45  ;;  %v1237_v45 = vld [vmem:[#allocation19 + $0x90] sm:$0xff] }
 0x39f   :  { %v802_v27 = vpop.f32.mrf.mxu0 }
 0x3a0   :  { %v808_v28 = vmul.f32 %v806_v26, %v802_v27  ;;  %v1247_v26 = vld [vmem:[#allocation19 + $0xe0] sm:$0xff]  ;;  %v1273_v27 = vld [vmem:[#allocation19 + $0x1b0] sm:$0xff] }
 0x3a2   :  { %949 = vmatmul.f32.vlgmr.msrb.gmra.mxu2 %v808_v28  ;;  %989 = vmatmul.f32.vlgmr.msrb.gmra.mxu0 %v808_v28  ;;  %v1248_v28 = vld [vmem:[#allocation19 + $0xe8] sm:$0xff] }
 0x3a3   :  { %1128 = vmatpush.msrb.mxu2 %v842_v61  ;;  %1171 = vmatpush.msrb.mxu0 %v842_v61  ;;  %v1257_v61 = vld [vmem:[#allocation19 + $0x130] sm:$0xff] }
 0x3a5   :  { %v782_v30 = vpop.f32.mrf.mxu3 }
 0x3a6   :  { %v807_v31 = vmul.f32 %v805_v29, %v782_v30  ;;  %v1274_v29 = vld [vmem:[#allocation19 + $0x1b8] sm:$0xff]  ;;  %v1245_v30 = vld [vmem:[#allocation19 + $0xd0] sm:$0xff] }
 0x3a8   :  { %929 = vmatmul.f32.vlgmr.msrb.gmra.mxu1 %v807_v31  ;;  %969 = vmatmul.f32.vlgmr.msra.gmra.mxu3 %v807_v31  ;;  %v1271_v31 = vld [vmem:[#allocation19 + $0x1a0] sm:$0xff] }
 0x3a9   :  { %1108 = vmatpush.msrb.mxu1 %v841_v60  ;;  %1151 = vmatpush.msra.mxu3 %v841_v60  ;;  %v1231_v60 = vld [vmem:[#allocation19 + $0x60] sm:$0xff] }
 0x41f   :  { %v990_v57 = vpop.f32.mrf.mxu0 }
 0x425   :  { %v930_v48 = vpop.f32.mrf.mxu1  ;;  %v950_v51 = vpop.f32.mrf.mxu2 }
 0x426   :  { %v931_v50 = vadd.f32 %v930_v48, %v909_v47  ;;  %v1238_v47 = vld [vmem:[#allocation19 + $0x98] sm:$0xff]  ;;  %v1264_v48 = vld [vmem:[#allocation19 + $0x168] sm:$0xff] }
 0x428   :  { %v3062_v52 = vadd.f32 %v950_v51, %v931_v50  ;;  %v1235_v50 = vld [vmem:[#allocation19 + $0x80] sm:$0xff]  ;;  %v1261_v51 = vld [vmem:[#allocation19 + $0x150] sm:$0xff] }
 0x42a   :  { %v1033_v54 = vmul.f32 %v3062_v52, %v3062_v52  ;;  %1009 = vmatmul.f32.vlgmr.msra.gmra.mxu1 %v3062_v52 }
 0x42b   :  { %v970_v55 = vpop.f32.mrf.mxu3  ;;  %1289 = vmatpush.msra.mxu1 %v1249_v22  ;;  %v3087_v22 = vld [vmem:[#allocation21 + $0xf0] sm:$0xff] }
 0x42c   :  { %v971_v56 = vadd.f32 %v970_v55, %v910_v53  ;;  %1051 = vmatmul.f32.vlgmr.msrb.gmra.mxu3 %v1033_v54  ;;  %v1236_v53 = vld [vmem:[#allocation19 + $0x88] sm:$0xff]  ;;  %v1262_v54 = vld [vmem:[#allocation19 + $0x158] sm:$0xff]  ;;  %v1233_v55 = vld [vmem:[#allocation19 + $0x70] sm:$0xff] }
 0x42d   :  { %1329 = vmatpush.msrb.mxu3 %v1250_v24  ;;  %1290 = vmatpush.msra.mxu1 %v1247_v26  ;;  %v3094_v24 = vld [vmem:[#allocation21 + $0x60] sm:$0xff]  ;;  %v3102_v26 = vld [vmem:[#allocation21 + $0x58] sm:$0xff] }
 0x42e   :  { %v3067_v58 = vadd.f32 %v990_v57, %v971_v56  ;;  %v1259_v56 = vld [vmem:[#allocation19 + $0x140] sm:$0xff]  ;;  %v1234_v57 = vld [vmem:[#allocation19 + $0x78] sm:$0xff] }
 0x42f   :  { %1330 = vmatpush.msrb.mxu3 %v1248_v28  ;;  %1291 = vmatpush.msra.mxu1 %v1245_v30  ;;  %v3110_v28 = vld [vmem:[#allocation21 + $0x50] sm:$0xff]  ;;  %v3118_v30 = vld [vmem:[#allocation21 + $0x48] sm:$0xff] }
 0x430   :  { %v1034_v59 = vmul.f32 %v3067_v58, %v3067_v58  ;;  %1029 = vmatmul.f32.vlgmr.msra.gmra.mxu2 %v3067_v58 }
 0x431   :  { %1309 = vmatpush.msra.mxu2 %v1281_v62  ;;  %1331 = vmatpush.msrb.mxu3 %v1246_v32  ;;  %v1232_v62 = vld [vmem:[#allocation19 + $0x68] sm:$0xff]  ;;  %v3126_v32 = vld [vmem:[#allocation21 + $0x40] sm:$0xff] }
 0x432   :  { %1071 = vmatmul.f32.vlgmr.msra.gmra.mxu0 %v1034_v59  ;;  %1292 = vmatpush.msra.mxu1 %v1243_v34  ;;  %v1260_v59 = vld [vmem:[#allocation19 + $0x148] sm:$0xff] }
 0x433   :  { %1349 = vmatpush.msra.mxu0 %v1282_v63  ;;  %1310 = vmatpush.msra.mxu2 %v1279_v18  ;;  %v1258_v63 = vld [vmem:[#allocation19 + $0x138] sm:$0xff] }
 0x434   :  { %1332 = vmatpush.msrb.mxu3 %v1244_v36  ;;  %1293 = vmatpush.msra.mxu1 %v1241_v49  ;;  %v3076_v18 = vld [vmem:[#allocation21 + $0x78] sm:$0xff] }
 0x435   :  { %1350 = vmatpush.msra.mxu0 %v1280_v19  ;;  %1311 = vmatpush.msra.mxu2 %v1277_v20  ;;  %v3078_v19 = vld [vmem:[#allocation21 + $0x70] sm:$0xff]  ;;  %v3082_v20 = vld [vmem:[#allocation21 + $0xf8] sm:$0xff] }
 0x436   :  { %1333 = vmatpush.msrb.mxu3 %v1242_v38  ;;  %1294 = vmatpush.msra.mxu1 %v1239_v40 }
 0x437   :  { %1351 = vmatpush.msra.mxu0 %v1278_v21  ;;  %1312 = vmatpush.msra.mxu2 %v1275_v23  ;;  %v3084_v21 = vld [vmem:[#allocation21 + $0x68] sm:$0xff] }
 0x438   :  { %1334 = vmatpush.msrb.mxu3 %v1240_v42  ;;  %1295 = vmatpush.msra.mxu1 %v1237_v45  ;;  %v3092_v23 = vld [vmem:[#allocation21 + $0xe8] sm:$0xff] }
 0x439   :  { %1352 = vmatpush.msra.mxu0 %v1276_v25  ;;  %1313 = vmatpush.msra.mxu2 %v1273_v27  ;;  %v3100_v25 = vld [vmem:[#allocation21 + $0xe0] sm:$0xff]  ;;  %v3108_v27 = vld [vmem:[#allocation21 + $0xd8] sm:$0xff] }
 0x43a   :  { %1335 = vmatpush.msrb.mxu3 %v1238_v47  ;;  %1296 = vmatpush.msra.mxu1 %v1235_v50  ;;  %v3152_v47 = vld [vmem:[#allocation21 + $0x20] sm:$0xff]  ;;  %v3160_v50 = vld [vmem:[#allocation21 + $0xb0] sm:$0xff] }
 0x43b   :  { %1353 = vmatpush.msra.mxu0 %v1274_v29  ;;  %1314 = vmatpush.msra.mxu2 %v1271_v31  ;;  %v3116_v29 = vld [vmem:[#allocation21 + $0xd0] sm:$0xff]  ;;  %v3124_v31 = vld [vmem:[#allocation21 + $0xc8] sm:$0xff] }
 0x43c   :  { %1336 = vmatpush.msrb.mxu3 %v1236_v53  ;;  %1297 = vmatpush.msra.mxu1 %v1233_v55  ;;  %v3170_v53 = vld [vmem:[#allocation21 + $0xa8] sm:$0xff]  ;;  %v3178_v55 = vld [vmem:[#allocation21 + $0xa0] sm:$0xff] }
 0x43d   :  { %1354 = vmatpush.msra.mxu0 %v1272_v33  ;;  %1315 = vmatpush.msra.mxu2 %v1269_v35  ;;  %v3132_v33 = vld [vmem:[#allocation21 + $0x38] sm:$0xff]  ;;  %v3138_v35 = vld [vmem:[#allocation21 + $0x30] sm:$0xff] }
 0x43e   :  { %1337 = vmatpush.msrb.mxu3 %v1234_v57  ;;  %1298 = vmatpush.msra.mxu1 %v1231_v60  ;;  %v3186_v57 = vld [vmem:[#allocation21 + $0x98] sm:$0xff]  ;;  %v3197_v60 = vld [vmem:[#allocation21 + $0x88] sm:$0xff] }
 0x43f   :  { %1355 = vmatpush.msra.mxu0 %v1270_v44  ;;  %1316 = vmatpush.msra.mxu2 %v1267_v37 }
 0x440   :  { %1338 = vmatpush.msrb.mxu3 %v1232_v62  ;;  %v1283_v62 = vld [vmem:[%s3355_s12] sm:$0x3] }
 0x441   :  { %1356 = vmatpush.msra.mxu0 %v1268_v39  ;;  %1317 = vmatpush.msra.mxu2 %v1265_v41 }
 0x443   :  { %1357 = vmatpush.msra.mxu0 %v1266_v43  ;;  %1318 = vmatpush.msra.mxu2 %v1263_v46  ;;  %v3148_v46 = vld [vmem:[#allocation21 + $0xc0] sm:$0xff] }
 0x445   :  { %1358 = vmatpush.msra.mxu0 %v1264_v48  ;;  %1319 = vmatpush.msra.mxu2 %v1261_v51  ;;  %v3158_v48 = vld [vmem:[#allocation21 + $0x18] sm:$0xff]  ;;  %v3168_v51 = vld [vmem:[#allocation21 + $0x10] sm:$0xff] }
 0x447   :  { %1359 = vmatpush.msra.mxu0 %v1262_v54  ;;  %1320 = vmatpush.msra.mxu2 %v1259_v56  ;;  %v3176_v54 = vld [vmem:[#allocation21 + $0x8] sm:$0xff]  ;;  %v3184_v56 = vld [vmem:[#allocation21] sm:$0xff] }
 0x449   :  { %1360 = vmatpush.msra.mxu0 %v1260_v59  ;;  %1321 = vmatpush.msra.mxu2 %v1257_v61  ;;  %v3192_v59 = vld [vmem:[#allocation21 + $0x90] sm:$0xff]  ;;  %v3201_v61 = vld [vmem:[#allocation21 + $0x80] sm:$0xff] }
 0x44b   :  { %1361 = vmatpush.msra.mxu0 %v1258_v63  ;;  %v1285_v63 = vperm.slane %v1283_v62, 0 }
 0x4a7   :  { %v1010_v2 = vpop.f32.mrf.mxu1 }
 0x4af   :  { %v1052_v0 = vpop.f32.mrf.mxu3  ;;  %v1072_v1 = vpop.f32.mrf.mxu0 }
 0x4b0   :  { %v1073_v4 = vadd.f32 %v1072_v1, %v1052_v0  ;;  %v1229_v0 = vld [vmem:[#allocation19 + $0x50] sm:$0xff]  ;;  %v1255_v1 = vld [vmem:[#allocation19 + $0x120] sm:$0xff] }
 0x4b1   :  { %1299 = vmatpush.msra.mxu1 %v1229_v0  ;;  %1322 = vmatpush.msra.mxu2 %v1255_v1 }
 0x4b2   :  { %v1076_v7 = vmul.f32 0.05882353, %v1073_v4  ;;  %v1227_v4 = vld [vmem:[#allocation19 + $0x40] sm:$0xff] }
 0x4b3   :  { %v1030_v3 = vpop.f32.mrf.mxu2  ;;  %1300 = vmatpush.msra.mxu1 %v1227_v4  ;;  %v1286_v4 = vperm.slane %v1283_v62, 1 }
 0x4b4   :  { %v1031_v5 = vadd.f32 %v1030_v3, %v1010_v2  ;;  %v1230_v2 = vld [vmem:[#allocation19 + $0x58] sm:$0xff]  ;;  %v1256_v3 = vld [vmem:[#allocation19 + $0x128] sm:$0xff] }
 0x4b5   :  { %1339 = vmatpush.msrb.mxu3 %v1230_v2  ;;  %1362 = vmatpush.msra.mxu0 %v1256_v3 }
 0x4b6   :  { %v1075_v6 = vmul.f32 0.05882353, %v1031_v5  ;;  %v1253_v5 = vld [vmem:[#allocation19 + $0x110] sm:$0xff] }
 0x4b7   :  { %1323 = vmatpush.msra.mxu2 %v1253_v5 }
 0x4b8   :  { %v1077_v8 = vmul.f32 %v1075_v6, %v1075_v6  ;;  %2199 = vmatmul.msk.f32.vlgmr.msrb.gmra.mxu1 %vm525_vm1, %v1075_v6  ;;  %2200 = vmatmul.msk.f32.vlgmr.msrb.gmra.mxu2 %vm525_vm1, %v1075_v6  ;;  %v1228_v6 = vld [vmem:[#allocation19 + $0x48] sm:$0xff] }
 0x4b9   :  { %1340 = vmatpush.msrb.mxu3 %v1228_v6 }
 0x4ba   :  { %v1078_v9 = vsub.f32 %v1076_v7, %v1077_v8  ;;  %v1254_v7 = vld [vmem:[#allocation19 + $0x118] sm:$0xff]  ;;  %v1225_v8 = vld [vmem:[#allocation19 + $0x30] sm:$0xff] }
 0x4bb   :  { %1363 = vmatpush.msra.mxu0 %v1254_v7  ;;  %1301 = vmatpush.msra.mxu1 %v1225_v8 }
 0x4bc   :  { %v1079_v10 = vadd.f32 1e-05, %v1078_v9  ;;  %v1251_v9 = vld [vmem:[#allocation19 + $0x100] sm:$0xff] }
 0x4bd   :  { %1324 = vmatpush.msra.mxu2 %v1251_v9 }
 0x4be   :  { %2251 = vrsqrt.f32 %v1079_v10  ;;  %vm1086_vm11 = vweird.f32 %v1079_v10 }
 0x4bf   :  { %1389 = vmatpush.msrb.mxu2 %v3082_v20 }
 0x4c1   :  { %1390 = vmatpush.msrb.mxu2 %v3087_v22 }
 0x4c3   :  { %1391 = vmatpush.msrb.mxu2 %v3092_v23 }
 0x4c4   :  { %v2252_v11 = vpop.eup %2251 }
 0x4c5   :  { %v1081_v12 = vmul.f32 %v2252_v11, %v1079_v10  ;;  %vm1087_vm10 = vweird.f32 %v2252_v11  ;;  %v1226_v10 = vld [vmem:[#allocation19 + $0x38] sm:$0xff]  ;;  %1392 = vmatpush.msrb.mxu2 %v3100_v25 }
 0x4c6   :  { %vm1088_vm12 = vmor %vm1086_vm11, %vm1087_vm10  ;;  %1341 = vmatpush.msrb.mxu3 %v1226_v10 }
 0x4c7   :  { %v1082_v13 = vmul.f32 %v2252_v11, %v1081_v12  ;;  %v1223_v12 = vld [vmem:[#allocation19 + $0x20] sm:$0xff]  ;;  %1393 = vmatpush.msrb.mxu2 %v3108_v27 }
 0x4c8   :  { %1302 = vmatpush.msra.mxu1 %v1223_v12 }
 0x4c9   :  { %v1083_v14 = vmul.f32 0.5, %v1082_v13  ;;  %v1224_v13 = vld [vmem:[#allocation19 + $0x28] sm:$0xff]  ;;  %1394 = vmatpush.msrb.mxu2 %v3116_v29 }
 0x4ca   :  { %1342 = vmatpush.msrb.mxu3 %v1224_v13 }
 0x4cb   :  { %v1084_v15 = vsub.f32 1.5, %v1083_v14  ;;  %v1221_v14 = vld [vmem:[#allocation19 + $0x10] sm:$0xff]  ;;  %1395 = vmatpush.msrb.mxu2 %v3124_v31 }
 0x4cc   :  { %1303 = vmatpush.msra.mxu1 %v1221_v14 }
 0x4cd   :  { %v1085_v16 = vmul.f32 %v2252_v11, %v1084_v15  ;;  %v1222_v15 = vld [vmem:[#allocation19 + $0x18] sm:$0xff]  ;;  %1396 = vmatpush.msrb.mxu2 %v3148_v46 }
 0x4ce   :  { %1343 = vmatpush.msrb.mxu3 %v1222_v15 }
 0x4cf   :  { %v1089_v17 = vsel %vm1088_vm12, %v2252_v11, %v1085_v16  ;;  %v1252_v11 = vld [vmem:[#allocation19 + $0x108] sm:$0xff]  ;;  %v1219_v16 = vld [vmem:[#allocation19] sm:$0xff] }
 0x4d0   :  { %2201 = vmatmul.msk.f32.vlgmr.msra.gmra.mxu3 %vm525_vm1, %v1089_v17  ;;  %2202 = vmatmul.msk.f32.vlgmr.msrb.gmra.mxu0 %vm525_vm1, %v1089_v17  ;;  %v1220_v17 = vld [vmem:[#allocation19 + $0x8] sm:$0xff] }
 0x4d1   :  { %1364 = vmatpush.msra.mxu0 %v1252_v11  ;;  %1304 = vmatpush.msra.mxu1 %v1219_v16  ;;  %v3222_v11 = vld [vmem:[%s3357_s14] sm:$0xff] }
 0x4d2   :  { %1344 = vmatpush.msrb.mxu3 %v1220_v17  ;;  %1467 = vst [vmem:[#allocation1] ss:$2 sm:$0xff] %v3222_v11 }
 0x4d3   :  { %1369 = vmatpush.msrb.mxu1 %v3076_v18  ;;  %1431 = vmatpush.msrb.mxu0 %v3082_v20 }
 0x4d4   :  { %1411 = vmatpush.msra.mxu3 %v3076_v18 }
 0x4d5   :  { %1370 = vmatpush.msrb.mxu1 %v3078_v19  ;;  %1432 = vmatpush.msrb.mxu0 %v3087_v22 }
 0x4d6   :  { %1412 = vmatpush.msra.mxu3 %v3078_v19 }
 0x4d7   :  { %1371 = vmatpush.msrb.mxu1 %v3084_v21  ;;  %1433 = vmatpush.msrb.mxu0 %v3092_v23 }
 0x4d8   :  { %1413 = vmatpush.msra.mxu3 %v3084_v21 }
 0x4d9   :  { %1372 = vmatpush.msrb.mxu1 %v3094_v24  ;;  %1434 = vmatpush.msrb.mxu0 %v3100_v25  ;;  %v1468_v12 = vld.sshfl [vmem:[#allocation1] sm:$0xff pattern:$0x75316420]  ;;  %v1469_v13 = vld.sshfl [vmem:[#allocation1 + $0x8] sm:$0xff pattern:$0x75316420] }
 0x4da   :  { %1414 = vmatpush.msra.mxu3 %v3094_v24  ;;  %1519 = vst [vmem:[#allocation1] ss:$2 sm:$0xff] %v3222_v11 }
 0x4db   :  { %1373 = vmatpush.msrb.mxu1 %v3102_v26  ;;  %1435 = vmatpush.msrb.mxu0 %v3108_v27 }
 0x4dc   :  { %1415 = vmatpush.msra.mxu3 %v3102_v26 }
 0x4dd   :  { %1374 = vmatpush.msrb.mxu1 %v3110_v28  ;;  %1436 = vmatpush.msrb.mxu0 %v3116_v29 }
 0x4de   :  { %1416 = vmatpush.msra.mxu3 %v3110_v28 }
 0x4df   :  { %1375 = vmatpush.msrb.mxu1 %v3118_v30  ;;  %1437 = vmatpush.msrb.mxu0 %v3124_v31 }
 0x4e0   :  { %1417 = vmatpush.msra.mxu3 %v3118_v30 }
 0x4e1   :  { %1376 = vmatpush.msrb.mxu1 %v3126_v32  ;;  %1438 = vmatpush.msrb.mxu0 %v3148_v46  ;;  %v1520_v14 = vld.sshfl [vmem:[#allocation1] sm:$0xff pattern:$0x75316420]  ;;  %v1521_v15 = vld.sshfl [vmem:[#allocation1 + $0x8] sm:$0xff pattern:$0x75316420] }
 0x4e2   :  { %1418 = vmatpush.msra.mxu3 %v3126_v32  ;;  %1676 = vst [vmem:[#allocation1] ss:$2 sm:$0xff] %v3222_v11 }
 0x4e3   :  { %1377 = vmatpush.msrb.mxu1 %v3132_v33 }
 0x4e4   :  { %1419 = vmatpush.msra.mxu3 %v3132_v33 }
 0x4e5   :  { %1378 = vmatpush.msrb.mxu1 %v3138_v35 }
 0x4e6   :  { %1420 = vmatpush.msra.mxu3 %v3138_v35 }
 0x535   :  { %v1110_v37 = vpop.f32.mrf.mxu1 }
 0x536   :  { %v1176_v39 = vsub.f32 %v3062_v52, %v1110_v37  ;;  %v3154_v52 = vld [vmem:[#allocation21 + $0xb8] sm:$0xff] }
 0x537   :  { %1397 = vmatpush.msrb.mxu2 %v3154_v52  ;;  %1439 = vmatpush.msrb.mxu0 %v3154_v52 }
 0x539   :  { %1398 = vmatpush.msrb.mxu2 %v3160_v50  ;;  %1440 = vmatpush.msrb.mxu0 %v3160_v50 }
 0x53b   :  { %v1130_v34 = vpop.f32.mrf.mxu2  ;;  %1399 = vmatpush.msrb.mxu2 %v3170_v53  ;;  %1441 = vmatpush.msrb.mxu0 %v3170_v53 }
 0x53c   :  { %v1177_v36 = vsub.f32 %v3067_v58, %v1130_v34  ;;  %v3146_v58 = vld [vmem:[#allocation21 + $0x28] sm:$0xff] }
 0x53d   :  { %1379 = vmatpush.msrb.mxu1 %v3146_v58  ;;  %1421 = vmatpush.msra.mxu3 %v3146_v58 }
 0x53e   :  { %1400 = vmatpush.msrb.mxu2 %v3178_v55  ;;  %1442 = vmatpush.msrb.mxu0 %v3178_v55 }
 0x53f   :  { %1380 = vmatpush.msrb.mxu1 %v3152_v47  ;;  %1422 = vmatpush.msra.mxu3 %v3152_v47 }
 0x540   :  { %1401 = vmatpush.msrb.mxu2 %v3186_v57  ;;  %1443 = vmatpush.msrb.mxu0 %v3186_v57 }
 0x541   :  { %1381 = vmatpush.msrb.mxu1 %v3158_v48  ;;  %1423 = vmatpush.msra.mxu3 %v3158_v48 }
 0x542   :  { %1402 = vmatpush.msrb.mxu2 %v3192_v59  ;;  %1444 = vmatpush.msrb.mxu0 %v3192_v59 }
 0x543   :  { %1382 = vmatpush.msrb.mxu1 %v3168_v51  ;;  %1424 = vmatpush.msra.mxu3 %v3168_v51 }
 0x544   :  { %1403 = vmatpush.msrb.mxu2 %v3197_v60  ;;  %1445 = vmatpush.msrb.mxu0 %v3197_v60 }
 0x545   :  { %1383 = vmatpush.msrb.mxu1 %v3176_v54  ;;  %1425 = vmatpush.msra.mxu3 %v3176_v54 }
 0x546   :  { %1404 = vmatpush.msrb.mxu2 %v3201_v61  ;;  %1446 = vmatpush.msrb.mxu0 %v3201_v61 }
 0x547   :  { %1384 = vmatpush.msrb.mxu1 %v3184_v56  ;;  %1426 = vmatpush.msra.mxu3 %v3184_v56 }
 0x54d   :  { %v1173_v44 = vpop.f32.mrf.mxu0 }
 0x54e   :  { %v1179_v49 = vmul.f32 %v1177_v36, %v1173_v44 }
 0x550   :  { %vm1181_vm13 = vcmp.ge.f32.partialorder %v1179_v49, 0.0  ;;  %v1183_v38 = vmul.f32 0.01, %v1179_v49 }
 0x552   :  { %v1185_v40 = vsel %vm1181_vm13, %v1179_v49, %v1183_v38 }
 0x553   :  { %v1153_v41 = vpop.f32.mrf.mxu3  ;;  %1325 = vmatmul.f32.vlgmr.msra.gmra.mxu2 %v1185_v40  ;;  %1365 = vmatmul.f32.vlgmr.msra.gmra.mxu0 %v1185_v40 }
 0x554   :  { %v1178_v42 = vmul.f32 %v1176_v39, %v1153_v41  ;;  %2205 = vmatpush.msk.msra.mxu2 %vm1474_vm15, %v1469_v13  ;;  %2209 = vmatpush.msk.msra.mxu0 %vm1474_vm15, %v1521_v15  ;;  %v1843_v13 = vld [vmem:[#allocation22 + $0xf0] sm:$0xff]  ;;  %v1844_v15 = vld [vmem:[#allocation22 + $0xf8] sm:$0xff] }
 0x556   :  { %vm1180_vm14 = vcmp.ge.f32.partialorder %v1178_v42, 0.0  ;;  %v1182_v43 = vmul.f32 0.01, %v1178_v42 }
 0x558   :  { %v1184_v45 = vsel %vm1180_vm14, %v1178_v42, %v1182_v43  ;;  %vm2174_vm14 = vcmask 1041408  }
 0x559   :  { %1305 = vmatmul.f32.vlgmr.msra.gmra.mxu1 %v1184_v45  ;;  %1345 = vmatmul.f32.vlgmr.msrb.gmra.mxu3 %v1184_v45 }
 0x55a   :  { %2203 = vmatpush.msk.msra.mxu1 %vm1474_vm15, %v1468_v12  ;;  %2207 = vmatpush.msk.msrb.mxu3 %vm1474_vm15, %v1520_v14  ;;  %v1872_v12 = vld [vmem:[#allocation22 + $0x1d8] sm:$0xff]  ;;  %v1869_v14 = vld [vmem:[#allocation22 + $0x1c0] sm:$0xff] }
 0x5d0   :  { %v1366_v8 = vpop.f32.mrf.mxu0 }
 0x5d6   :  { %v1306_v0 = vpop.f32.mrf.mxu1  ;;  %v1326_v2 = vpop.f32.mrf.mxu2 }
 0x5d7   :  { %v1307_v1 = vadd.f32 %v1306_v0, %v1285_v63 }
 0x5d9   :  { %v3209_v3 = vadd.f32 %v1326_v2, %v1307_v1 }
 0x5db   :  { %v1409_v5 = vmul.f32 %v3209_v3, %v3209_v3  ;;  %1385 = vmatmul.f32.vlgmr.msrb.gmra.mxu1 %v3209_v3 }
 0x5dc   :  { %v1346_v6 = vpop.f32.mrf.mxu3  ;;  %1579 = vmatpush.msrb.mxu1 %v3076_v18 }
 0x5dd   :  { %v1347_v7 = vadd.f32 %v1346_v6, %v1286_v4  ;;  %1427 = vmatmul.f32.vlgmr.msra.gmra.mxu3 %v1409_v5 }
 0x5de   :  { %1580 = vmatpush.msrb.mxu1 %v3078_v19  ;;  %1621 = vmatpush.msra.mxu3 %v3076_v18 }
 0x5df   :  { %v3214_v9 = vadd.f32 %v1366_v8, %v1347_v7  ;;  %v1875_v7 = vld [vmem:[#allocation22 + $0x1f0] sm:$0xff]  ;;  %v1876_v8 = vld [vmem:[#allocation22 + $0x1f8] sm:$0xff] }
 0x5e0   :  { %1581 = vmatpush.msrb.mxu1 %v3084_v21  ;;  %1622 = vmatpush.msra.mxu3 %v3078_v19 }
 0x5e1   :  { %v1410_v10 = vmul.f32 %v3214_v9, %v3214_v9  ;;  %1405 = vmatmul.f32.vlgmr.msrb.gmra.mxu2 %v3214_v9 }
 0x5e2   :  { %1599 = vmatpush.msrb.mxu2 %v3082_v20  ;;  %1582 = vmatpush.msrb.mxu1 %v3094_v24 }
 0x5e3   :  { %1447 = vmatmul.f32.vlgmr.msrb.gmra.mxu0 %v1410_v10  ;;  %1623 = vmatpush.msra.mxu3 %v3084_v21  ;;  %v1874_v10 = vld [vmem:[#allocation22 + $0x1e8] sm:$0xff] }
 0x5e4   :  { %1600 = vmatpush.msrb.mxu2 %v3087_v22  ;;  %1583 = vmatpush.msrb.mxu1 %v3102_v26 }
 0x5e5   :  { %1641 = vmatpush.msrb.mxu0 %v3082_v20  ;;  %1624 = vmatpush.msra.mxu3 %v3094_v24 }
 0x5e6   :  { %1601 = vmatpush.msrb.mxu2 %v3092_v23  ;;  %1584 = vmatpush.msrb.mxu1 %v3110_v28 }
 0x5e7   :  { %1642 = vmatpush.msrb.mxu0 %v3087_v22  ;;  %1625 = vmatpush.msra.mxu3 %v3102_v26 }
 0x5e8   :  { %1602 = vmatpush.msrb.mxu2 %v3100_v25  ;;  %1585 = vmatpush.msrb.mxu1 %v3118_v30 }
 0x5e9   :  { %1643 = vmatpush.msrb.mxu0 %v3092_v23  ;;  %1626 = vmatpush.msra.mxu3 %v3110_v28 }
 0x5ea   :  { %1603 = vmatpush.msrb.mxu2 %v3108_v27  ;;  %1586 = vmatpush.msrb.mxu1 %v3126_v32 }
 0x5eb   :  { %1644 = vmatpush.msrb.mxu0 %v3100_v25  ;;  %1627 = vmatpush.msra.mxu3 %v3118_v30 }
 0x5ec   :  { %1604 = vmatpush.msrb.mxu2 %v3116_v29  ;;  %1587 = vmatpush.msrb.mxu1 %v3132_v33 }
 0x5ed   :  { %1645 = vmatpush.msrb.mxu0 %v3108_v27  ;;  %1628 = vmatpush.msra.mxu3 %v3126_v32 }
 0x5ee   :  { %1605 = vmatpush.msrb.mxu2 %v3124_v31  ;;  %1588 = vmatpush.msrb.mxu1 %v3138_v35 }
 0x5ef   :  { %1646 = vmatpush.msrb.mxu0 %v3116_v29  ;;  %1629 = vmatpush.msra.mxu3 %v3132_v33 }
 0x5f0   :  { %1606 = vmatpush.msrb.mxu2 %v3148_v46  ;;  %1589 = vmatpush.msrb.mxu1 %v3146_v58 }
 0x5f1   :  { %1647 = vmatpush.msrb.mxu0 %v3124_v31  ;;  %1630 = vmatpush.msra.mxu3 %v3138_v35 }
 0x5f2   :  { %1607 = vmatpush.msrb.mxu2 %v3154_v52  ;;  %1590 = vmatpush.msrb.mxu1 %v3152_v47 }
 0x5f3   :  { %1648 = vmatpush.msrb.mxu0 %v3148_v46  ;;  %1631 = vmatpush.msra.mxu3 %v3146_v58  ;;  %v1677_v46 = vld.sshfl [vmem:[#allocation1] sm:$0xff pattern:$0x75316420] }
 0x5f4   :  { %1608 = vmatpush.msrb.mxu2 %v3160_v50  ;;  %1591 = vmatpush.msrb.mxu1 %v3158_v48 }
 0x5f5   :  { %1649 = vmatpush.msrb.mxu0 %v3154_v52  ;;  %1632 = vmatpush.msra.mxu3 %v3152_v47  ;;  %v1678_v47 = vld.sshfl [vmem:[#allocation1 + $0x8] sm:$0xff pattern:$0x75316420] }
 0x5f6   :  { %1609 = vmatpush.msrb.mxu2 %v3170_v53  ;;  %1592 = vmatpush.msrb.mxu1 %v3168_v51  ;;  %1726 = vst [vmem:[#allocation1] ss:$2 sm:$0xff] %v3222_v11  ;;  %v1871_v11 = vld [vmem:[#allocation22 + $0x1d0] sm:$0xff] }
 0x5f7   :  { %1650 = vmatpush.msrb.mxu0 %v3160_v50  ;;  %1633 = vmatpush.msra.mxu3 %v3158_v48  ;;  %v3319_v50 = vld [vmem:[%s3361_s18] sm:$0xff] }
 0x5f8   :  { %1610 = vmatpush.msrb.mxu2 %v3178_v55  ;;  %1593 = vmatpush.msrb.mxu1 %v3176_v54 }
 0x5f9   :  { %1651 = vmatpush.msrb.mxu0 %v3170_v53  ;;  %1634 = vmatpush.msra.mxu3 %v3168_v51 }
 0x5fa   :  { %1611 = vmatpush.msrb.mxu2 %v3186_v57  ;;  %1594 = vmatpush.msrb.mxu1 %v3184_v56 }
 0x5fb   :  { %1652 = vmatpush.msrb.mxu0 %v3178_v55  ;;  %1635 = vmatpush.msra.mxu3 %v3176_v54 }
 0x5fc   :  { %1612 = vmatpush.msrb.mxu2 %v3192_v59 }
 0x5fd   :  { %1653 = vmatpush.msrb.mxu0 %v3186_v57  ;;  %1636 = vmatpush.msra.mxu3 %v3184_v56  ;;  %v1727_v52 = vld.sshfl [vmem:[#allocation1] sm:$0xff pattern:$0x75316420]  ;;  %v1728_v48 = vld.sshfl [vmem:[#allocation1 + $0x8] sm:$0xff pattern:$0x75316420] }
 0x5fe   :  { %1613 = vmatpush.msrb.mxu2 %v3197_v60  ;;  %2061 = vst [vmem:[#allocation1] ss:$2 sm:$0xff] %v3319_v50 }
 0x5ff   :  { %1654 = vmatpush.msrb.mxu0 %v3192_v59 }
 0x600   :  { %1614 = vmatpush.msrb.mxu2 %v3201_v61 }
 0x601   :  { %1655 = vmatpush.msrb.mxu0 %v3197_v60 }
 0x603   :  { %1656 = vmatpush.msrb.mxu0 %v3201_v61 }
 0x658   :  { %v1386_v18 = vpop.f32.mrf.mxu1 }
 0x660   :  { %v1428_v16 = vpop.f32.mrf.mxu3  ;;  %v1448_v17 = vpop.f32.mrf.mxu0 }
 0x661   :  { %v1449_v20 = vadd.f32 %v1448_v17, %v1428_v16  ;;  %v1870_v16 = vld [vmem:[#allocation22 + $0x1c8] sm:$0xff]  ;;  %v1841_v17 = vld [vmem:[#allocation22 + $0xe0] sm:$0xff] }
 0x663   :  { %v1452_v23 = vmul.f32 0.027027028, %v1449_v20  ;;  %v1868_v20 = vld [vmem:[#allocation22 + $0x1b8] sm:$0xff] }
 0x664   :  { %v1406_v19 = vpop.f32.mrf.mxu2 }
 0x665   :  { %v1407_v21 = vadd.f32 %v1406_v19, %v1386_v18  ;;  %v1867_v18 = vld [vmem:[#allocation22 + $0x1b0] sm:$0xff]  ;;  %v1842_v19 = vld [vmem:[#allocation22 + $0xe8] sm:$0xff] }
 0x667   :  { %v1451_v22 = vmul.f32 0.027027028, %v1407_v21  ;;  %v1839_v21 = vld [vmem:[#allocation22 + $0xd0] sm:$0xff] }
 0x669   :  { %v1453_v24 = vmul.f32 %v1451_v22, %v1451_v22  ;;  %2204 = vmatmul.msk.f32.vlgmr.msra.gmra.mxu1 %vm1470_vm0, %v1451_v22  ;;  %2206 = vmatmul.msk.f32.vlgmr.msra.gmra.mxu2 %vm1470_vm0, %v1451_v22  ;;  %v1865_v22 = vld [vmem:[#allocation22 + $0x1a0] sm:$0xff] }
 0x66a   :  { %2211 = vmatpush.msk.msra.mxu1 %vm1474_vm15, %v1677_v46  ;;  %2213 = vmatpush.msk.msra.mxu2 %vm1474_vm15, %v1678_v47  ;;  %v1853_v46 = vld [vmem:[#allocation22 + $0x140] sm:$0xff]  ;;  %v1828_v47 = vld [vmem:[#allocation22 + $0x78] sm:$0xff] }
 0x66b   :  { %v1454_v25 = vsub.f32 %v1452_v23, %v1453_v24  ;;  %v1840_v23 = vld [vmem:[#allocation22 + $0xd8] sm:$0xff]  ;;  %v1866_v24 = vld [vmem:[#allocation22 + $0x1a8] sm:$0xff] }
 0x66d   :  { %v1455_v26 = vadd.f32 1e-05, %v1454_v25  ;;  %v1837_v25 = vld [vmem:[#allocation22 + $0xc0] sm:$0xff] }
 0x66f   :  { %2253 = vrsqrt.f32 %v1455_v26  ;;  %vm1462_vm2 = vweird.f32 %v1455_v26 }
 0x675   :  { %v2254_v27 = vpop.eup %2253 }
 0x676   :  { %v1457_v28 = vmul.f32 %v2254_v27, %v1455_v26  ;;  %vm1463_vm1 = vweird.f32 %v2254_v27  ;;  %v1863_v26 = vld [vmem:[#allocation22 + $0x190] sm:$0xff] }
 0x677   :  { %vm1464_vm3 = vmor %vm1462_vm2, %vm1463_vm1 }
 0x678   :  { %v1458_v29 = vmul.f32 %v2254_v27, %v1457_v28  ;;  %v1864_v28 = vld [vmem:[#allocation22 + $0x198] sm:$0xff] }
 0x67a   :  { %v1459_v30 = vmul.f32 0.5, %v1458_v29  ;;  %v1835_v29 = vld [vmem:[#allocation22 + $0xb0] sm:$0xff] }
 0x67c   :  { %v1460_v31 = vsub.f32 1.5, %v1459_v30  ;;  %v1861_v30 = vld [vmem:[#allocation22 + $0x180] sm:$0xff] }
 0x67e   :  { %v1461_v32 = vmul.f32 %v2254_v27, %v1460_v31  ;;  %v1836_v31 = vld [vmem:[#allocation22 + $0xb8] sm:$0xff] }
 0x680   :  { %v1465_v33 = vsel %vm1464_vm3, %v2254_v27, %v1461_v32  ;;  %v1838_v27 = vld [vmem:[#allocation22 + $0xc8] sm:$0xff] }
 0x681   :  { %2208 = vmatmul.msk.f32.vlgmr.msrb.gmra.mxu3 %vm1470_vm0, %v1465_v33  ;;  %2210 = vmatmul.msk.f32.vlgmr.msra.gmra.mxu0 %vm1470_vm0, %v1465_v33  ;;  %v1862_v32 = vld [vmem:[#allocation22 + $0x188] sm:$0xff]  ;;  %v1833_v33 = vld [vmem:[#allocation22 + $0xa0] sm:$0xff] }
 0x682   :  { %2215 = vmatpush.msk.msrb.mxu3 %vm1474_vm15, %v1727_v52  ;;  %2217 = vmatpush.msk.msra.mxu0 %vm1474_vm15, %v1728_v48  ;;  %v1854_v52 = vld [vmem:[#allocation22 + $0x148] sm:$0xff]  ;;  %v1825_v48 = vld [vmem:[#allocation22 + $0x60] sm:$0xff] }
 0x6e6   :  { %v1496_v49 = vpop.f32.mrf.mxu1 }
 0x6e7   :  { %v1569_v38 = vsub.f32 %v3209_v3, %v1496_v49  ;;  %v1857_v49 = vld [vmem:[#allocation22 + $0x160] sm:$0xff] }
 0x6ec   :  { %v1516_v34 = vpop.f32.mrf.mxu2 }
 0x6ed   :  { %v1570_v35 = vsub.f32 %v3214_v9, %v1516_v34  ;;  %v1873_v9 = vld [vmem:[#allocation22 + $0x1e0] sm:$0xff]  ;;  %v1859_v34 = vld [vmem:[#allocation22 + $0x170] sm:$0xff] }
 0x6fe   :  { %v1566_v36 = vpop.f32.mrf.mxu0 }
 0x6ff   :  { %v1572_v44 = vmul.f32 %v1570_v35, %v1566_v36  ;;  %v1834_v35 = vld [vmem:[#allocation22 + $0xa8] sm:$0xff]  ;;  %v1860_v36 = vld [vmem:[#allocation22 + $0x178] sm:$0xff] }
 0x701   :  { %vm1574_vm4 = vcmp.ge.f32.partialorder %v1572_v44, 0.0  ;;  %v1576_v37 = vmul.f32 0.01, %v1572_v44 }
 0x703   :  { %v3301_v39 = vsel %vm1574_vm4, %v1572_v44, %v1576_v37  ;;  %v1831_v44 = vld [vmem:[#allocation22 + $0x90] sm:$0xff]  ;;  %v1832_v37 = vld [vmem:[#allocation22 + $0x98] sm:$0xff] }
 0x704   :  { %v1546_v40 = vpop.f32.mrf.mxu3  ;;  %1615 = vmatmul.f32.vlgmr.msrb.gmra.mxu2 %v3301_v39  ;;  %v1620_v41 = vmul.f32 %v3301_v39, %v3301_v39 }
 0x705   :  { %v1571_v42 = vmul.f32 %v1569_v38, %v1546_v40  ;;  %1903 = vmatpush.msrb.mxu2 %v1875_v7  ;;  %v1858_v38 = vld [vmem:[#allocation22 + $0x168] sm:$0xff]  ;;  %v1829_v40 = vld [vmem:[#allocation22 + $0x80] sm:$0xff]  ;;  %v1816_v7 = vld [vmem:[#allocation22 + $0x18] sm:$0xff] }
 0x706   :  { %1657 = vmatmul.f32.vlgmr.msrb.gmra.mxu0 %v1620_v41  ;;  %v1855_v41 = vld [vmem:[#allocation22 + $0x150] sm:$0xff] }
 0x707   :  { %vm1573_vm5 = vcmp.ge.f32.partialorder %v1571_v42, 0.0  ;;  %v1575_v43 = vmul.f32 0.01, %v1571_v42  ;;  %1943 = vmatpush.msrb.mxu0 %v1876_v8  ;;  %1904 = vmatpush.msrb.mxu2 %v1873_v9  ;;  %v1813_v8 = vld [vmem:[#allocation22] sm:$0xff]  ;;  %v1814_v9 = vld [vmem:[#allocation22 + $0x8] sm:$0xff] }
 0x709   :  { %v3306_v45 = vsel %vm1573_vm5, %v1571_v42, %v1575_v43  ;;  %1944 = vmatpush.msrb.mxu0 %v1874_v10  ;;  %1905 = vmatpush.msrb.mxu2 %v1871_v11  ;;  %v1830_v42 = vld [vmem:[#allocation22 + $0x88] sm:$0xff]  ;;  %v1856_v43 = vld [vmem:[#allocation22 + $0x158] sm:$0xff]  ;;  %v1794_v11 = vld [vmem:[#allocation24 + $0x70] sm:$0xff] }
 0x70a   :  { %1595 = vmatmul.f32.vlgmr.msrb.gmra.mxu1 %v3306_v45  ;;  %v1619_v58 = vmul.f32 %v3306_v45, %v3306_v45  ;;  %v1795_v10 = vld [vmem:[#allocation24 + $0x78] sm:$0xff] }
 0x70b   :  { %1945 = vmatpush.msrb.mxu0 %v1872_v12  ;;  %1883 = vmatpush.msrb.mxu1 %v1843_v13  ;;  %v1811_v12 = vld [vmem:[#allocation24 + $0xf8] sm:$0xff]  ;;  %v1793_v13 = vld [vmem:[#allocation24 + $0x68] sm:$0xff] }
 0x70c   :  { %1637 = vmatmul.f32.vlgmr.msra.gmra.mxu3 %v1619_v58  ;;  %1906 = vmatpush.msrb.mxu2 %v1869_v14  ;;  %v1827_v58 = vld [vmem:[#allocation22 + $0x70] sm:$0xff] }
 0x70d   :  { %1923 = vmatpush.msra.mxu3 %v1844_v15  ;;  %1946 = vmatpush.msrb.mxu0 %v1870_v16  ;;  %v1810_v14 = vld [vmem:[#allocation24 + $0xf0] sm:$0xff]  ;;  %v1809_v15 = vld [vmem:[#allocation24 + $0xe8] sm:$0xff]  ;;  %v1792_v16 = vld [vmem:[#allocation24 + $0x60] sm:$0xff] }
 0x70e   :  { %1884 = vmatpush.msrb.mxu1 %v1841_v17  ;;  %1907 = vmatpush.msrb.mxu2 %v1867_v18  ;;  %v1808_v17 = vld [vmem:[#allocation24 + $0xe0] sm:$0xff]  ;;  %v1791_v18 = vld [vmem:[#allocation24 + $0x58] sm:$0xff] }
 0x70f   :  { %1924 = vmatpush.msra.mxu3 %v1842_v19  ;;  %1947 = vmatpush.msrb.mxu0 %v1868_v20  ;;  %v1807_v19 = vld [vmem:[#allocation24 + $0xd8] sm:$0xff]  ;;  %v1790_v20 = vld [vmem:[#allocation24 + $0x50] sm:$0xff] }
 0x710   :  { %1885 = vmatpush.msrb.mxu1 %v1839_v21  ;;  %1908 = vmatpush.msrb.mxu2 %v1865_v22  ;;  %v1806_v21 = vld [vmem:[#allocation24 + $0xd0] sm:$0xff]  ;;  %v1789_v22 = vld [vmem:[#allocation24 + $0x48] sm:$0xff] }
 0x711   :  { %1925 = vmatpush.msra.mxu3 %v1840_v23  ;;  %1948 = vmatpush.msrb.mxu0 %v1866_v24  ;;  %v1805_v23 = vld [vmem:[#allocation24 + $0xc8] sm:$0xff]  ;;  %v1788_v24 = vld [vmem:[#allocation24 + $0x40] sm:$0xff] }
 0x712   :  { %1886 = vmatpush.msrb.mxu1 %v1837_v25  ;;  %1909 = vmatpush.msrb.mxu2 %v1863_v26  ;;  %v1787_v25 = vld [vmem:[#allocation24 + $0x38] sm:$0xff]  ;;  %v1786_v26 = vld [vmem:[#allocation24 + $0x30] sm:$0xff] }
 0x713   :  { %1926 = vmatpush.msra.mxu3 %v1838_v27  ;;  %1949 = vmatpush.msrb.mxu0 %v1864_v28 }
 0x714   :  { %1887 = vmatpush.msrb.mxu1 %v1835_v29  ;;  %1910 = vmatpush.msrb.mxu2 %v1861_v30 }
 0x715   :  { %1927 = vmatpush.msra.mxu3 %v1836_v31  ;;  %1950 = vmatpush.msrb.mxu0 %v1862_v32 }
 0x716   :  { %1888 = vmatpush.msrb.mxu1 %v1833_v33  ;;  %1911 = vmatpush.msrb.mxu2 %v1859_v34 }
 0x717   :  { %1928 = vmatpush.msra.mxu3 %v1834_v35  ;;  %1951 = vmatpush.msrb.mxu0 %v1860_v36  ;;  %v1785_v35 = vld [vmem:[#allocation24 + $0x28] sm:$0xff]  ;;  %v1804_v36 = vld [vmem:[#allocation24 + $0xc0] sm:$0xff] }
 0x718   :  { %1889 = vmatpush.msrb.mxu1 %v1831_v44  ;;  %1912 = vmatpush.msrb.mxu2 %v1857_v49  ;;  %v1784_v44 = vld [vmem:[#allocation24 + $0x20] sm:$0xff]  ;;  %v1803_v49 = vld [vmem:[#allocation24 + $0xb8] sm:$0xff] }
 0x719   :  { %1929 = vmatpush.msra.mxu3 %v1832_v37  ;;  %1952 = vmatpush.msrb.mxu0 %v1858_v38  ;;  %v1802_v37 = vld [vmem:[#allocation24 + $0xb0] sm:$0xff]  ;;  %v1801_v38 = vld [vmem:[#allocation24 + $0xa8] sm:$0xff] }
 0x71a   :  { %1890 = vmatpush.msrb.mxu1 %v1829_v40  ;;  %1913 = vmatpush.msrb.mxu2 %v1855_v41  ;;  %v1781_v40 = vld [vmem:[#allocation24 + $0x8] sm:$0xff]  ;;  %v1800_v41 = vld [vmem:[#allocation24 + $0xa0] sm:$0xff] }
 0x71b   :  { %1930 = vmatpush.msra.mxu3 %v1830_v42  ;;  %1953 = vmatpush.msrb.mxu0 %v1856_v43  ;;  %v1780_v42 = vld [vmem:[#allocation24] sm:$0xff]  ;;  %v1799_v43 = vld [vmem:[#allocation24 + $0x98] sm:$0xff] }
 0x71c   :  { %1891 = vmatpush.msrb.mxu1 %v1827_v58  ;;  %1914 = vmatpush.msrb.mxu2 %v1853_v46  ;;  %v1798_v58 = vld [vmem:[#allocation24 + $0x90] sm:$0xff]  ;;  %v1797_v46 = vld [vmem:[#allocation24 + $0x88] sm:$0xff] }
 0x71d   :  { %1931 = vmatpush.msra.mxu3 %v1828_v47  ;;  %1954 = vmatpush.msrb.mxu0 %v1854_v52  ;;  %v1796_v47 = vld [vmem:[#allocation24 + $0x80] sm:$0xff]  ;;  %v1877_v52 = vld [vmem:[%s3359_s16] sm:$0x3] }
 0x71e   :  { %1892 = vmatpush.msrb.mxu1 %v1825_v48  ;;  %v1879_v48 = vperm.slane %v1877_v52, 0 }
 0x783   :  { %v1658_v56 = vpop.f32.mrf.mxu0 }
 0x787   :  { %v1596_v51 = vpop.f32.mrf.mxu1  ;;  %v1616_v53 = vpop.f32.mrf.mxu2 }
 0x788   :  { %v1617_v54 = vadd.f32 %v1616_v53, %v1596_v51  ;;  %v1851_v51 = vld [vmem:[#allocation22 + $0x130] sm:$0xff]  ;;  %v1826_v53 = vld [vmem:[#allocation22 + $0x68] sm:$0xff] }
 0x789   :  { %1915 = vmatpush.msrb.mxu2 %v1851_v51  ;;  %1932 = vmatpush.msra.mxu3 %v1826_v53 }
 0x78a   :  { %v1661_v55 = vmul.f32 0.027027028, %v1617_v54  ;;  %v1852_v54 = vld [vmem:[#allocation22 + $0x138] sm:$0xff] }
 0x78b   :  { %1955 = vmatpush.msrb.mxu0 %v1852_v54 }
 0x78c   :  { %2212 = vmatmul.msk.f32.vlgmr.msra.gmra.mxu1 %vm1470_vm0, %v1661_v55  ;;  %2214 = vmatmul.msk.f32.vlgmr.msra.gmra.mxu2 %vm1470_vm0, %v1661_v55  ;;  %v1663_v61 = vmul.f32 %v1661_v55, %v1661_v55  ;;  %v1823_v55 = vld [vmem:[#allocation22 + $0x50] sm:$0xff] }
 0x78d   :  { %1893 = vmatpush.msrb.mxu1 %v1823_v55 }
 0x78f   :  { %v1638_v57 = vpop.f32.mrf.mxu3 }
 0x790   :  { %v1659_v59 = vadd.f32 %v1658_v56, %v1638_v57  ;;  %v1849_v56 = vld [vmem:[#allocation22 + $0x120] sm:$0xff]  ;;  %v1824_v57 = vld [vmem:[#allocation22 + $0x58] sm:$0xff] }
 0x791   :  { %1916 = vmatpush.msrb.mxu2 %v1849_v56  ;;  %1933 = vmatpush.msra.mxu3 %v1824_v57  ;;  %v1880_v56 = vperm.slane %v1877_v52, 1 }
 0x792   :  { %v1662_v60 = vmul.f32 0.027027028, %v1659_v59  ;;  %v1850_v59 = vld [vmem:[#allocation22 + $0x128] sm:$0xff] }
 0x793   :  { %1956 = vmatpush.msrb.mxu0 %v1850_v59 }
 0x794   :  { %v1664_v62 = vsub.f32 %v1662_v60, %v1663_v61  ;;  %v1821_v60 = vld [vmem:[#allocation22 + $0x40] sm:$0xff]  ;;  %v1847_v61 = vld [vmem:[#allocation22 + $0x110] sm:$0xff] }
 0x795   :  { %1894 = vmatpush.msrb.mxu1 %v1821_v60  ;;  %1917 = vmatpush.msrb.mxu2 %v1847_v61 }
 0x796   :  { %v1665_v63 = vadd.f32 1e-05, %v1664_v62  ;;  %v1822_v62 = vld [vmem:[#allocation22 + $0x48] sm:$0xff] }
 0x797   :  { %1934 = vmatpush.msra.mxu3 %v1822_v62 }
 0x798   :  { %2255 = vrsqrt.f32 %v1665_v63  ;;  %vm1672_vm7 = vweird.f32 %v1665_v63 }
 0x79e   :  { %v2256_v0 = vpop.eup %2255 }
 0x79f   :  { %v1667_v1 = vmul.f32 %v2256_v0, %v1665_v63  ;;  %vm1673_vm6 = vweird.f32 %v2256_v0  ;;  %v1848_v63 = vld [vmem:[#allocation22 + $0x118] sm:$0xff] }
 0x7a0   :  { %vm1674_vm8 = vmor %vm1672_vm7, %vm1673_vm6  ;;  %1957 = vmatpush.msrb.mxu0 %v1848_v63 }
 0x7a1   :  { %v1668_v2 = vmul.f32 %v2256_v0, %v1667_v1  ;;  %v1845_v1 = vld [vmem:[#allocation22 + $0x100] sm:$0xff] }
 0x7a2   :  { %1918 = vmatpush.msrb.mxu2 %v1845_v1  ;;  %v2063_v1 = vld.sshfl [vmem:[#allocation1 + $0x8] sm:$0xff pattern:$0x75316420] }
 0x7a3   :  { %v1669_v3 = vmul.f32 0.5, %v1668_v2  ;;  %v1820_v2 = vld [vmem:[#allocation22 + $0x38] sm:$0xff] }
 0x7a4   :  { %1935 = vmatpush.msra.mxu3 %v1820_v2  ;;  %1983 = vmatpush.msra.mxu2 %v1811_v12 }
 0x7a5   :  { %v1670_v4 = vsub.f32 1.5, %v1669_v3  ;;  %v1846_v3 = vld [vmem:[#allocation22 + $0x108] sm:$0xff] }
 0x7a6   :  { %1958 = vmatpush.msrb.mxu0 %v1846_v3  ;;  %1984 = vmatpush.msra.mxu2 %v1810_v14 }
 0x7a7   :  { %v1671_v5 = vmul.f32 %v2256_v0, %v1670_v4  ;;  %v1817_v4 = vld [vmem:[#allocation22 + $0x20] sm:$0xff] }
 0x7a8   :  { %1985 = vmatpush.msra.mxu2 %v1809_v15 }
 0x7a9   :  { %v1675_v6 = vsel %vm1674_vm8, %v2256_v0, %v1671_v5  ;;  %v1819_v0 = vld [vmem:[#allocation22 + $0x30] sm:$0xff]  ;;  %v1818_v5 = vld [vmem:[#allocation22 + $0x28] sm:$0xff] }
 0x7aa   :  { %2216 = vmatmul.msk.f32.vlgmr.msrb.gmra.mxu3 %vm1470_vm0, %v1675_v6  ;;  %2218 = vmatmul.msk.f32.vlgmr.msra.gmra.mxu0 %vm1470_vm0, %v1675_v6  ;;  %v1815_v6 = vld [vmem:[#allocation22 + $0x10] sm:$0xff] }
 0x7ab   :  { %1895 = vmatpush.msrb.mxu1 %v1819_v0  ;;  %1936 = vmatpush.msra.mxu3 %v1818_v5  ;;  %v2062_v0 = vld.sshfl [vmem:[#allocation1] sm:$0xff pattern:$0x75316420] }
 0x7ac   :  { %2025 = vmatpush.msra.mxu0 %v1811_v12  ;;  %1986 = vmatpush.msra.mxu2 %v1808_v17  ;;  %2111 = vst [vmem:[#allocation1] ss:$2 sm:$0xff] %v3319_v50 }
 0x7ad   :  { %1896 = vmatpush.msrb.mxu1 %v1817_v4  ;;  %1937 = vmatpush.msra.mxu3 %v1816_v7 }
 0x7ae   :  { %2026 = vmatpush.msra.mxu0 %v1810_v14  ;;  %1987 = vmatpush.msra.mxu2 %v1807_v19 }
 0x7af   :  { %1897 = vmatpush.msrb.mxu1 %v1815_v6  ;;  %1938 = vmatpush.msra.mxu3 %v1814_v9 }
 0x7b0   :  { %2027 = vmatpush.msra.mxu0 %v1809_v15  ;;  %1988 = vmatpush.msra.mxu2 %v1806_v21 }
 0x7b1   :  { %1898 = vmatpush.msrb.mxu1 %v1813_v8  ;;  %2005 = vmatpush.msrb.mxu3 %v1795_v10 }
 0x7b2   :  { %2028 = vmatpush.msra.mxu0 %v1808_v17  ;;  %1989 = vmatpush.msra.mxu2 %v1805_v23 }
 0x7b3   :  { %1963 = vmatpush.msra.mxu1 %v1795_v10  ;;  %2006 = vmatpush.msrb.mxu3 %v1794_v11  ;;  %v2112_v2 = vld.sshfl [vmem:[#allocation1] sm:$0xff pattern:$0x75316420]  ;;  %v2113_v3 = vld.sshfl [vmem:[#allocation1 + $0x8] sm:$0xff pattern:$0x75316420] }
 0x7b4   :  { %2029 = vmatpush.msra.mxu0 %v1807_v19  ;;  %1990 = vmatpush.msra.mxu2 %v1804_v36 }
 0x7b5   :  { %1964 = vmatpush.msra.mxu1 %v1794_v11  ;;  %2007 = vmatpush.msrb.mxu3 %v1793_v13 }
 0x7b6   :  { %2030 = vmatpush.msra.mxu0 %v1806_v21  ;;  %1991 = vmatpush.msra.mxu2 %v1803_v49 }
 0x7b7   :  { %1965 = vmatpush.msra.mxu1 %v1793_v13  ;;  %2008 = vmatpush.msrb.mxu3 %v1792_v16 }
 0x7b8   :  { %2031 = vmatpush.msra.mxu0 %v1805_v23  ;;  %1992 = vmatpush.msra.mxu2 %v1802_v37 }
 0x7b9   :  { %1966 = vmatpush.msra.mxu1 %v1792_v16  ;;  %2009 = vmatpush.msrb.mxu3 %v1791_v18 }
 0x7ba   :  { %2032 = vmatpush.msra.mxu0 %v1804_v36  ;;  %1993 = vmatpush.msra.mxu2 %v1801_v38 }
 0x7bb   :  { %1967 = vmatpush.msra.mxu1 %v1791_v18  ;;  %2010 = vmatpush.msrb.mxu3 %v1790_v20 }
 0x7bc   :  { %2033 = vmatpush.msra.mxu0 %v1803_v49  ;;  %1994 = vmatpush.msra.mxu2 %v1800_v41 }
 0x7bd   :  { %1968 = vmatpush.msra.mxu1 %v1790_v20  ;;  %2011 = vmatpush.msrb.mxu3 %v1789_v22 }
 0x7be   :  { %2034 = vmatpush.msra.mxu0 %v1802_v37  ;;  %1995 = vmatpush.msra.mxu2 %v1799_v43 }
 0x7bf   :  { %1969 = vmatpush.msra.mxu1 %v1789_v22  ;;  %2012 = vmatpush.msrb.mxu3 %v1788_v24 }
 0x7c0   :  { %2035 = vmatpush.msra.mxu0 %v1801_v38  ;;  %1996 = vmatpush.msra.mxu2 %v1798_v58 }
 0x7c1   :  { %1970 = vmatpush.msra.mxu1 %v1788_v24  ;;  %2013 = vmatpush.msrb.mxu3 %v1787_v25 }
 0x7c2   :  { %2036 = vmatpush.msra.mxu0 %v1800_v41  ;;  %1997 = vmatpush.msra.mxu2 %v1797_v46 }
 0x7c3   :  { %1971 = vmatpush.msra.mxu1 %v1787_v25  ;;  %2014 = vmatpush.msrb.mxu3 %v1786_v26 }
 0x7c4   :  { %2037 = vmatpush.msra.mxu0 %v1799_v43  ;;  %1998 = vmatpush.msra.mxu2 %v1796_v47 }
 0x7c5   :  { %1972 = vmatpush.msra.mxu1 %v1786_v26  ;;  %2015 = vmatpush.msrb.mxu3 %v1785_v35 }
 0x7c6   :  { %2038 = vmatpush.msra.mxu0 %v1798_v58 }
 0x7c7   :  { %1973 = vmatpush.msra.mxu1 %v1785_v35  ;;  %2016 = vmatpush.msrb.mxu3 %v1784_v44 }
 0x7c8   :  { %2039 = vmatpush.msra.mxu0 %v1797_v46 }
 0x7c9   :  { %1974 = vmatpush.msra.mxu1 %v1784_v44 }
 0x7ca   :  { %2040 = vmatpush.msra.mxu0 %v1796_v47 }
 0x809   :  { %v1703_v31 = vpop.f32.mrf.mxu1 }
 0x80a   :  { %v1776_v32 = vsub.f32 %v3306_v45, %v1703_v31  ;;  %v1782_v45 = vld [vmem:[#allocation24 + $0x10] sm:$0xff] }
 0x80f   :  { %v1723_v27 = vpop.f32.mrf.mxu2 }
 0x810   :  { %v1777_v28 = vsub.f32 %v3301_v39, %v1723_v27  ;;  %v1783_v39 = vld [vmem:[#allocation24 + $0x18] sm:$0xff] }
 0x811   :  { %1975 = vmatpush.msra.mxu1 %v1783_v39  ;;  %2017 = vmatpush.msrb.mxu3 %v1783_v39 }
 0x813   :  { %1976 = vmatpush.msra.mxu1 %v1782_v45  ;;  %2018 = vmatpush.msrb.mxu3 %v1782_v45 }
 0x815   :  { %1977 = vmatpush.msra.mxu1 %v1781_v40  ;;  %2019 = vmatpush.msrb.mxu3 %v1781_v40 }
 0x817   :  { %1978 = vmatpush.msra.mxu1 %v1780_v42  ;;  %2020 = vmatpush.msrb.mxu3 %v1780_v42 }
 0x827   :  { %v1773_v29 = vpop.f32.mrf.mxu0 }
 0x828   :  { %v1779_v30 = vmul.f32 %v1777_v28, %v1773_v29 }
 0x82a   :  { %1919 = vmatmul.f32.vlgmr.msrb.gmra.mxu2 %v1779_v30  ;;  %1959 = vmatmul.f32.vlgmr.msrb.gmra.mxu0 %v1779_v30 }
 0x82b   :  { %2221 = vmatpush.msk.msrb.mxu2 %vm1474_vm15, %v2063_v1  ;;  %2225 = vmatpush.msk.msrb.mxu0 %vm1474_vm15, %v2113_v3 }
 0x82d   :  { %v1753_v33 = vpop.f32.mrf.mxu3 }
 0x82e   :  { %v1778_v34 = vmul.f32 %v1776_v32, %v1753_v33 }
 0x830   :  { %1899 = vmatmul.f32.vlgmr.msrb.gmra.mxu1 %v1778_v34  ;;  %1939 = vmatmul.f32.vlgmr.msra.gmra.mxu3 %v1778_v34 }
 0x831   :  { %2219 = vmatpush.msk.msrb.mxu1 %vm1474_vm15, %v2062_v0  ;;  %2223 = vmatpush.msk.msra.mxu3 %vm1474_vm15, %v2112_v2 }
 0x8a7   :  { %v1960_v61 = vpop.f32.mrf.mxu0 }
 0x8ad   :  { %v1900_v51 = vpop.f32.mrf.mxu1  ;;  %v1920_v54 = vpop.f32.mrf.mxu2 }
 0x8ae   :  { %v1901_v53 = vadd.f32 %v1900_v51, %v1879_v48 }
 0x8b0   :  { %v1921_v55 = vadd.f32 %v1920_v54, %v1901_v53 }
 0x8b2   :  { %v2003_v57 = vmul.f32 %v1921_v55, %v1921_v55  ;;  %1979 = vmatmul.f32.vlgmr.msra.gmra.mxu1 %v1921_v55 }
 0x8b3   :  { %v1940_v59 = vpop.f32.mrf.mxu3 }
 0x8b4   :  { %v1941_v60 = vadd.f32 %v1940_v59, %v1880_v56  ;;  %2021 = vmatmul.f32.vlgmr.msrb.gmra.mxu3 %v2003_v57 }
 0x8b6   :  { %v1961_v62 = vadd.f32 %v1960_v61, %v1941_v60 }
 0x8b8   :  { %v2004_v63 = vmul.f32 %v1961_v62, %v1961_v62  ;;  %1999 = vmatmul.f32.vlgmr.msra.gmra.mxu2 %v1961_v62 }
 0x8ba   :  { %2041 = vmatmul.f32.vlgmr.msra.gmra.mxu0 %v2004_v63 }
 0x92f   :  { %v1980_v6 = vpop.f32.mrf.mxu1 }
 0x937   :  { %v2022_v4 = vpop.f32.mrf.mxu3  ;;  %v2042_v5 = vpop.f32.mrf.mxu0 }
 0x938   :  { %v2043_v8 = vadd.f32 %v2042_v5, %v2022_v4 }
 0x93a   :  { %v2046_v11 = vmul.f32 0.027027028, %v2043_v8 }
 0x93b   :  { %v2000_v7 = vpop.f32.mrf.mxu2 }
 0x93c   :  { %v2001_v9 = vadd.f32 %v2000_v7, %v1980_v6 }
 0x93e   :  { %v2045_v10 = vmul.f32 0.027027028, %v2001_v9 }
 0x940   :  { %v2047_v12 = vmul.f32 %v2045_v10, %v2045_v10  ;;  %2220 = vmatmul.msk.f32.vlgmr.msrb.gmra.mxu1 %vm1470_vm0, %v2045_v10  ;;  %2222 = vmatmul.msk.f32.vlgmr.msrb.gmra.mxu2 %vm1470_vm0, %v2045_v10 }
 0x942   :  { %v2048_v50 = vsub.f32 %v2046_v11, %v2047_v12 }
 0x944   :  { %v2049_v13 = vadd.f32 1e-05, %v2048_v50 }
 0x946   :  { %2257 = vrsqrt.f32 %v2049_v13  ;;  %vm2056_vm10 = vweird.f32 %v2049_v13 }
 0x94c   :  { %v2258_v14 = vpop.eup %2257 }
 0x94d   :  { %v2051_v15 = vmul.f32 %v2258_v14, %v2049_v13  ;;  %vm2057_vm9 = vweird.f32 %v2258_v14 }
 0x94e   :  { %vm2058_vm11 = vmor %vm2056_vm10, %vm2057_vm9 }
 0x94f   :  { %v2052_v16 = vmul.f32 %v2258_v14, %v2051_v15 }
 0x951   :  { %v2053_v17 = vmul.f32 0.5, %v2052_v16 }
 0x953   :  { %v2054_v18 = vsub.f32 1.5, %v2053_v17 }
 0x955   :  { %v2055_v19 = vmul.f32 %v2258_v14, %v2054_v18 }
 0x957   :  { %v2059_v20 = vsel %vm2058_vm11, %v2258_v14, %v2055_v19 }
 0x958   :  { %2224 = vmatmul.msk.f32.vlgmr.msra.gmra.mxu3 %vm1470_vm0, %v2059_v20  ;;  %2226 = vmatmul.msk.f32.vlgmr.msrb.gmra.mxu0 %vm1470_vm0, %v2059_v20 }
 0x9bd   :  { %v2088_v25 = vpop.f32.mrf.mxu1 }
 0x9be   :  { %v2161_v27 = vsub.f32 %v1921_v55, %v2088_v25 }
 0x9c3   :  { %v2108_v21 = vpop.f32.mrf.mxu2 }
 0x9c4   :  { %v2162_v22 = vsub.f32 %v1961_v62, %v2108_v21 }
 0x9d5   :  { %v2158_v23 = vpop.f32.mrf.mxu0 }
 0x9d6   :  { %v2164_v24 = vmul.f32 %v2162_v22, %v2158_v23 }
 0x9d8   :  { %v2168_v26 = vmul.f32 0.01, %v2164_v24  ;;  %vm2166_vm12 = vcmp.ge.f32.partialorder %v2164_v24, 0.0 }
 0x9da   :  { %v2170_v29 = vsel %vm2166_vm12, %v2164_v24, %v2168_v26 }
 0x9db   :  { %v2138_v28 = vpop.f32.mrf.mxu3  ;;  %v2173_v32 = vrot.slane %v2170_v29, 6 }
 0x9dc   :  { %v2163_v30 = vmul.f32 %v2161_v27, %v2138_v28 }
 0x9de   :  { %vm2165_vm13 = vcmp.ge.f32.partialorder %v2163_v30, 0.0  ;;  %v2167_v31 = vmul.f32 0.01, %v2163_v30 }
 0x9e0   :  { %v2169_v33 = vsel %vm2165_vm13, %v2163_v30, %v2167_v31 }
 0x9e1   :  { %v2175_v34 = vsel %vm2174_vm14, %v2169_v33, %v2173_v32 }
 0x9e2   :  { %2177 = vst [vmem:[%s3372_s25] sm:$0xf] %v2175_v34 }
 0x9e3   :  { %2182 = vsyncpa [#allocation3], 1 }
 0x9e4   :  { %2183 = vsyncpa [#allocation5], 1 }
 0x9e5   :  { %2184 = vsyncpa [#allocation8], 1 }
 0x9e6   :  { %2185 = vsyncpa [#allocation11], 1 }
 0x9e7   :  { %2186 = vsyncpa [#allocation14], 1 }
 0x9e8   :  { %2187 = vsyncpa [#allocation17], 1 }
 0x9e9   :  { %2188 = vsyncpa [#allocation20], 1 }
 0x9ea   :  { %2189 = vsyncpa [#allocation23], 1 }

</bundles_post_ra>
